<compile_context>
chip_gen: v6e
topology: v6e:2x2x1
jax: 0.10.0
libtpu: 0.0.40
codegen_flags: <defaults>
</compile_context>

<pallas_src>
import functools

import jax
import jax.numpy as jnp
from jax.experimental import pallas as pl
from jax.experimental.pallas import tpu as pltpu

SELU_ALPHA = 1.6732632423543772
SELU_SCALE = 1.0507009873554805


def _selu(x):
    return SELU_SCALE * jnp.where(x > 0, x, SELU_ALPHA * (jnp.exp(x) - 1.0))


# --------------------------------------------------------------------------
# Kernels
# --------------------------------------------------------------------------
def mlp_kernel(x_ref, w1_ref, b1_ref, w2_ref, b2_ref, w3_ref, b3_ref, z_ref):
    """MLP (3 layers, SELU) + L2-normalize for one batch tile; z is bf16."""
    h = jnp.dot(x_ref[...], w1_ref[...],
                preferred_element_type=jnp.float32) + b1_ref[...]
    h = _selu(h)
    h = jnp.dot(h.astype(w2_ref.dtype), w2_ref[...],
                preferred_element_type=jnp.float32) + b2_ref[...]
    h = _selu(h)
    z = jnp.dot(h.astype(w3_ref.dtype), w3_ref[...],
                preferred_element_type=jnp.float32) + b3_ref[...]
    # F.normalize(z, dim=-1, p=2):  z / max(||z||, 1e-12)
    sumsq = jnp.sum(z * z, axis=-1, keepdims=True)
    z_ref[...] = (z * jax.lax.rsqrt(jnp.maximum(sumsq, 1e-24))).astype(z_ref.dtype)


def proj_kernel(z_ref, scale_ref, v_ref, o_ref):
    """Weight-normalized projection: (z @ V_tile) * scale_tile, cast to out dtype."""
    o_ref[...] = (jnp.dot(z_ref[...], v_ref[...],
                          preferred_element_type=jnp.float32)
                  * scale_ref[...]).astype(o_ref.dtype)


# --------------------------------------------------------------------------
# Helpers
# --------------------------------------------------------------------------
def _pick_tile(dim, cap, preferred=(256, 128, 16, 8, 1)):
    """Largest divisor of `dim` that is <= cap, preferring MXU/lane-friendly
    multiples (256/128)."""
    cap = min(cap, dim)
    for mult in preferred:
        for t in range(cap, 0, -1):
            if dim % t == 0 and t % mult == 0:
                return t
    return dim


def _vmem_limit_bytes():
    """~75% of physical VMEM (v7x: 64 MiB -> 48 MiB; v5e/v6e: 128 -> 96 MiB)."""
    try:
        cap = pltpu.get_tpu_info().vmem_capacity_bytes
    except Exception:
        return 64 * 1024 * 1024
    return min(int(cap * 3 // 4), 112 * 1024 * 1024)


def _resident_spec(block_shape, single_buffer):
    """BlockSpec for a VMEM-resident weight (constant block index).

    single_buffer=True requests a 1-deep pipeline so the auto-pipeliner does
    not double-buffer it (halves its VMEM footprint — matters on v7x)."""
    index_map = lambda i: (0,) * len(block_shape)
    if single_buffer and hasattr(pl, "Buffered"):
        try:
            return pl.BlockSpec(block_shape, index_map,
                                pipeline_mode=pl.Buffered(1))
        except TypeError:  # BlockSpec without pipeline_mode support
            pass
    return pl.BlockSpec(block_shape, index_map)


# --------------------------------------------------------------------------
# Wrapper
# --------------------------------------------------------------------------
@functools.partial(
    jax.jit,
    static_argnames=("tm", "tn", "compute_dtype", "out_dtype",
                     "single_buffer_resident"))
def head_forward(x, w1, b1, w2, b2, w3, b3, g, v, *, tm=None, tn=None,
                 compute_dtype=jnp.bfloat16, out_dtype=jnp.bfloat16,
                 single_buffer_resident=True):
    B, in_dim = x.shape
    hidden = w1.shape[1]
    bottleneck, out_dim = v.shape

    if tm is None:
        tm = _pick_tile(B, 512)
    if tn is None:
        tn = _pick_tile(out_dim, 2048)
    assert B % tm == 0, "batch must be divisible by the batch tile"
    assert out_dim % tn == 0, "out_dim must be divisible by the N tile"

    vmem_limit = _vmem_limit_bytes()

    # Hoisted weight-norm scale (fp32): torch weight_norm(dim=0) normalizes
    # each output row of W, i.e. each column of V = W.T here.
    vf = v.astype(jnp.float32)
    scale = (g.astype(jnp.float32)
             / jnp.sqrt(jnp.sum(vf * vf, axis=0, keepdims=True)))

    # bf16 operands for the MXU; biases / scale stay fp32.
    xc = x.astype(compute_dtype)
    w1c, w2c, w3c, vc = (w1.astype(compute_dtype), w2.astype(compute_dtype),
                         w3.astype(compute_dtype), v.astype(compute_dtype))
    b1f, b2f, b3f = (b1.astype(jnp.float32), b2.astype(jnp.float32),
                     b3.astype(jnp.float32))

    # ---------------- Pass 1: MLP + L2-normalize -> z (B, bottleneck) bf16 --
    z = pl.pallas_call(
        mlp_kernel,
        out_shape=jax.ShapeDtypeStruct((B, bottleneck), compute_dtype),
        grid_spec=pltpu.PrefetchScalarGridSpec(
            num_scalar_prefetch=0,
            grid=(B // tm,),
            in_specs=[
                pl.BlockSpec((tm, in_dim), lambda i: (i, 0)),                   # x tile
                _resident_spec((in_dim, hidden), single_buffer_resident),       # W1
                _resident_spec((1, hidden), single_buffer_resident),            # b1
                _resident_spec((hidden, hidden), single_buffer_resident),       # W2
                _resident_spec((1, hidden), single_buffer_resident),            # b2
                _resident_spec((hidden, bottleneck), single_buffer_resident),   # W3
                _resident_spec((1, bottleneck), single_buffer_resident),        # b3
            ],
            out_specs=pl.BlockSpec((tm, bottleneck), lambda i: (i, 0)),
        ),
        compiler_params=pltpu.CompilerParams(
            dimension_semantics=("parallel",),
            vmem_limit_bytes=vmem_limit,
        ),
    )(xc, w1c, b1f, w2c, b2f, w3c, b3f)

    # ---------------- Pass 2: tiled weight-normalized projection ------------
    # Grid: out_dim tiles OUTER, batch tiles INNER -> each V tile's block
    # index is constant across the inner loop, so V is streamed exactly once.
    grid = (out_dim // tn, B // tm)
    y = pl.pallas_call(
        proj_kernel,
        out_shape=jax.ShapeDtypeStruct((B, out_dim), out_dtype),
        grid_spec=pltpu.PrefetchScalarGridSpec(
            num_scalar_prefetch=0,
            grid=grid,
            in_specs=[
                pl.BlockSpec((tm, bottleneck), lambda j, i: (i, 0)),   # z tile (tiny)
                pl.BlockSpec((1, tn), lambda j, i: (0, j)),            # scale tile
                pl.BlockSpec((bottleneck, tn), lambda j, i: (0, j)),   # V tile
            ],
            out_specs=pl.BlockSpec((tm, tn), lambda j, i: (i, j)),
        ),
        compiler_params=pltpu.CompilerParams(
            # Shard the out_dim (outer) axis across TensorCores so total V
            # traffic stays one pass; the inner batch axis is sequential.
            dimension_semantics=("parallel", "arbitrary"),
            vmem_limit_bytes=vmem_limit,
        ),
    )(z, scale, vc)
    return y


def head_reference(x, w1, b1, w2, b2, w3, b3, g, v):
    h = _selu(x @ w1 + b1)
    h = _selu(h @ w2 + b2)
    z = h @ w3 + b3
    z = z / jnp.maximum(jnp.linalg.norm(z, axis=-1, keepdims=True), 1e-12)
    w_last = g * v / jnp.sqrt(jnp.sum(v * v, axis=0, keepdims=True))
    return z @ w_last


if __name__ == "__main__":
    # Small (but lane-dense, tile-divisible) shapes consistent with the module.
    B, in_dim, hidden_dim, bottleneck_dim, out_dim = 32, 128, 128, 128, 256

    key = jax.random.PRNGKey(0)
    ks = jax.random.split(key, 5)

    # nn.init.normal_(weight, std=0.02); biases = 0  (stored transposed: (in, out))
    w1 = 0.02 * jax.random.normal(ks[0], (in_dim, hidden_dim), jnp.float32)
    b1 = jnp.zeros((1, hidden_dim), jnp.float32)
    w2 = 0.02 * jax.random.normal(ks[1], (hidden_dim, hidden_dim), jnp.float32)
    b2 = jnp.zeros((1, hidden_dim), jnp.float32)
    w3 = 0.02 * jax.random.normal(ks[2], (hidden_dim, bottleneck_dim), jnp.float32)
    b3 = jnp.zeros((1, bottleneck_dim), jnp.float32)

    # weight_norm'd last layer: g filled with 1, v random (v = torch weight.T).
    g = jnp.ones((1, out_dim), jnp.float32)
    v = 0.02 * jax.random.normal(ks[3], (bottleneck_dim, out_dim), jnp.float32)

    x = jax.random.normal(ks[4], (B, in_dim), jnp.float32)

    def _run(**kw):
        out = head_forward(x, w1, b1, w2, b2, w3, b3, g, v, tm=16, tn=128, **kw)
        return jax.block_until_ready(out)

    try:
        y = _run()
    except Exception:
        # Graceful fallback if this JAX build rejects 1-deep (single-buffered)
        # pipeline_mode on the resident-weight BlockSpecs.
        y = _run(single_buffer_resident=False)

    y_ref = head_reference(x, w1, b1, w2, b2, w3, b3, g, v)
    assert y.shape == (B, out_dim)
    assert y.dtype == jnp.bfloat16
    # bf16 operands + bf16 output with fp32 accumulation -> loose tolerance.
    yf = y.astype(jnp.float32)
    assert jnp.allclose(yf, y_ref, atol=2e-2, rtol=2e-2), (
        float(jnp.max(jnp.abs(yf - y_ref))))

    print("KERNEL_OK")
</pallas_src>

<mosaic_0001>
module attributes {stable_mosaic.version = 11 : i64} {
  func.func @mlp_kernel(%arg0: i32, %arg1: memref<16x128xbf16, #tpu.memory_space<vmem>>, %arg2: memref<128x128xbf16, #tpu.memory_space<vmem>>, %arg3: memref<1x128xf32, #tpu.memory_space<vmem>>, %arg4: memref<128x128xbf16, #tpu.memory_space<vmem>>, %arg5: memref<1x128xf32, #tpu.memory_space<vmem>>, %arg6: memref<128x128xbf16, #tpu.memory_space<vmem>>, %arg7: memref<1x128xf32, #tpu.memory_space<vmem>>, %arg8: memref<16x128xbf16, #tpu.memory_space<vmem>>) attributes {dimension_semantics = [#tpu.dimension_semantics<parallel>], iteration_bounds = array<i64: 2>, scalar_prefetch = 0 : i64, scratch_operands = 0 : i64, tpu.core_type = #tpu.core_type<tc>, window_params = [{transform_indices = @transform_0, window_bounds = array<i64: 16, 128>}, {pipeline_mode = #tpu.pipeline_mode<synchronous>, transform_indices = @transform_1, window_bounds = array<i64: 128, 128>}, {pipeline_mode = #tpu.pipeline_mode<synchronous>, transform_indices = @transform_2, window_bounds = array<i64: 1, 128>}, {pipeline_mode = #tpu.pipeline_mode<synchronous>, transform_indices = @transform_3, window_bounds = array<i64: 128, 128>}, {pipeline_mode = #tpu.pipeline_mode<synchronous>, transform_indices = @transform_4, window_bounds = array<i64: 1, 128>}, {pipeline_mode = #tpu.pipeline_mode<synchronous>, transform_indices = @transform_5, window_bounds = array<i64: 128, 128>}, {pipeline_mode = #tpu.pipeline_mode<synchronous>, transform_indices = @transform_6, window_bounds = array<i64: 1, 128>}, {transform_indices = @transform_7, window_bounds = array<i64: 16, 128>}]} {
    %c0 = arith.constant 0 : index
    %c0_0 = arith.constant 0 : index
    %0 = vector.load %arg1[%c0, %c0_0] : memref<16x128xbf16, #tpu.memory_space<vmem>>, vector<16x128xbf16>
    %c0_1 = arith.constant 0 : index
    %c0_2 = arith.constant 0 : index
    %1 = vector.load %arg2[%c0_1, %c0_2] : memref<128x128xbf16, #tpu.memory_space<vmem>>, vector<128x128xbf16>
    %cst = arith.constant dense<0.000000e+00> : vector<16x128xf32>
    %2 = tpu.matmul %0, %1, %cst {dimension_numbers = #tpu.dot_dimension_numbers<[1], [0], [0], [1], [0, 0, 1, 1], [], []>} : vector<16x128xbf16>, vector<128x128xbf16>, vector<16x128xf32> -> vector<16x128xf32>
    %c0_3 = arith.constant 0 : index
    %c0_4 = arith.constant 0 : index
    %3 = vector.load %arg3[%c0_3, %c0_4] : memref<1x128xf32, #tpu.memory_space<vmem>>, vector<1x128xf32>
    %4 = vector.broadcast %3 : vector<1x128xf32> to vector<16x128xf32>
    %5 = arith.addf %2, %4 : vector<16x128xf32>
    %cst_5 = arith.constant 0.000000e+00 : f32
    %6 = vector.broadcast %cst_5 : f32 to vector<16x128xf32>
    %7 = arith.cmpf ogt, %5, %6 : vector<16x128xf32>
    %8 = math.exp %5 : vector<16x128xf32>
    %cst_6 = arith.constant 1.000000e+00 : f32
    %9 = vector.broadcast %cst_6 : f32 to vector<16x128xf32>
    %10 = arith.subf %8, %9 : vector<16x128xf32>
    %cst_7 = arith.constant 1.67326319 : f32
    %11 = vector.broadcast %cst_7 : f32 to vector<16x128xf32>
    %12 = arith.mulf %11, %10 : vector<16x128xf32>
    %13 = arith.select %7, %5, %12 : vector<16x128xi1>, vector<16x128xf32>
    %cst_8 = arith.constant 1.05070102 : f32
    %14 = vector.broadcast %cst_8 : f32 to vector<16x128xf32>
    %15 = arith.mulf %14, %13 : vector<16x128xf32>
    %16 = arith.truncf %15 : vector<16x128xf32> to vector<16x128xbf16>
    %c0_9 = arith.constant 0 : index
    %c0_10 = arith.constant 0 : index
    %17 = vector.load %arg4[%c0_9, %c0_10] : memref<128x128xbf16, #tpu.memory_space<vmem>>, vector<128x128xbf16>
    %cst_11 = arith.constant dense<0.000000e+00> : vector<16x128xf32>
    %18 = tpu.matmul %16, %17, %cst_11 {dimension_numbers = #tpu.dot_dimension_numbers<[1], [0], [0], [1], [0, 0, 1, 1], [], []>} : vector<16x128xbf16>, vector<128x128xbf16>, vector<16x128xf32> -> vector<16x128xf32>
    %c0_12 = arith.constant 0 : index
    %c0_13 = arith.constant 0 : index
    %19 = vector.load %arg5[%c0_12, %c0_13] : memref<1x128xf32, #tpu.memory_space<vmem>>, vector<1x128xf32>
    %20 = vector.broadcast %19 : vector<1x128xf32> to vector<16x128xf32>
    %21 = arith.addf %18, %20 : vector<16x128xf32>
    %cst_14 = arith.constant 0.000000e+00 : f32
    %22 = vector.broadcast %cst_14 : f32 to vector<16x128xf32>
    %23 = arith.cmpf ogt, %21, %22 : vector<16x128xf32>
    %24 = math.exp %21 : vector<16x128xf32>
    %cst_15 = arith.constant 1.000000e+00 : f32
    %25 = vector.broadcast %cst_15 : f32 to vector<16x128xf32>
    %26 = arith.subf %24, %25 : vector<16x128xf32>
    %cst_16 = arith.constant 1.67326319 : f32
    %27 = vector.broadcast %cst_16 : f32 to vector<16x128xf32>
    %28 = arith.mulf %27, %26 : vector<16x128xf32>
    %29 = arith.select %23, %21, %28 : vector<16x128xi1>, vector<16x128xf32>
    %cst_17 = arith.constant 1.05070102 : f32
    %30 = vector.broadcast %cst_17 : f32 to vector<16x128xf32>
    %31 = arith.mulf %30, %29 : vector<16x128xf32>
    %32 = arith.truncf %31 : vector<16x128xf32> to vector<16x128xbf16>
    %c0_18 = arith.constant 0 : index
    %c0_19 = arith.constant 0 : index
    %33 = vector.load %arg6[%c0_18, %c0_19] : memref<128x128xbf16, #tpu.memory_space<vmem>>, vector<128x128xbf16>
    %cst_20 = arith.constant dense<0.000000e+00> : vector<16x128xf32>
    %34 = tpu.matmul %32, %33, %cst_20 {dimension_numbers = #tpu.dot_dimension_numbers<[1], [0], [0], [1], [0, 0, 1, 1], [], []>} : vector<16x128xbf16>, vector<128x128xbf16>, vector<16x128xf32> -> vector<16x128xf32>
    %c0_21 = arith.constant 0 : index
    %c0_22 = arith.constant 0 : index
    %35 = vector.load %arg7[%c0_21, %c0_22] : memref<1x128xf32, #tpu.memory_space<vmem>>, vector<1x128xf32>
    %36 = vector.broadcast %35 : vector<1x128xf32> to vector<16x128xf32>
    %37 = arith.addf %34, %36 : vector<16x128xf32>
    %38 = arith.mulf %37, %37 : vector<16x128xf32>
    %cst_23 = arith.constant dense<0.000000e+00> : vector<16xf32>
    %39 = vector.multi_reduction <add>, %38, %cst_23 [1] : vector<16x128xf32> to vector<16xf32>
    %40 = vector.shape_cast %39 : vector<16xf32> to vector<16x1xf32>
    %cst_24 = arith.constant 1.000000e-24 : f32
    %41 = vector.broadcast %cst_24 : f32 to vector<16x1xf32>
    %42 = arith.maximumf %40, %41 : vector<16x1xf32>
    %43 = math.rsqrt %42 : vector<16x1xf32>
    %44 = vector.broadcast %43 : vector<16x1xf32> to vector<16x128xf32>
    %45 = arith.mulf %37, %44 : vector<16x128xf32>
    %46 = arith.truncf %45 : vector<16x128xf32> to vector<16x128xbf16>
    %c0_25 = arith.constant 0 : index
    %c0_26 = arith.constant 0 : index
    %47 = vector.load %arg8[%c0_25, %c0_26] : memref<16x128xbf16, #tpu.memory_space<vmem>>, vector<16x128xbf16>
    tpu.vector_store %arg8[%c0_25, %c0_26], %46 {strides = array<i32>} : memref<16x128xbf16, #tpu.memory_space<vmem>>, vector<16x128xbf16>,
    return
  }
  func.func @transform_0(%arg0: i32) -> (i32, i32) {
    %c0_i32 = arith.constant 0 : i32
    %c0_i32_0 = arith.constant 0 : i32
    return %arg0, %c0_i32 : i32, i32
  }
  func.func @transform_1(%arg0: i32) -> (i32, i32) {
    %c0_i32 = arith.constant 0 : i32
    %c0_i32_0 = arith.constant 0 : i32
    %c0_i32_1 = arith.constant 0 : i32
    return %c0_i32, %c0_i32_0 : i32, i32
  }
  func.func @transform_2(%arg0: i32) -> (i32, i32) {
    %c0_i32 = arith.constant 0 : i32
    %c0_i32_0 = arith.constant 0 : i32
    %c0_i32_1 = arith.constant 0 : i32
    return %c0_i32, %c0_i32_0 : i32, i32
  }
  func.func @transform_3(%arg0: i32) -> (i32, i32) {
    %c0_i32 = arith.constant 0 : i32
    %c0_i32_0 = arith.constant 0 : i32
    %c0_i32_1 = arith.constant 0 : i32
    return %c0_i32, %c0_i32_0 : i32, i32
  }
  func.func @transform_4(%arg0: i32) -> (i32, i32) {
    %c0_i32 = arith.constant 0 : i32
    %c0_i32_0 = arith.constant 0 : i32
    %c0_i32_1 = arith.constant 0 : i32
    return %c0_i32, %c0_i32_0 : i32, i32
  }
  func.func @transform_5(%arg0: i32) -> (i32, i32) {
    %c0_i32 = arith.constant 0 : i32
    %c0_i32_0 = arith.constant 0 : i32
    %c0_i32_1 = arith.constant 0 : i32
    return %c0_i32, %c0_i32_0 : i32, i32
  }
  func.func @transform_6(%arg0: i32) -> (i32, i32) {
    %c0_i32 = arith.constant 0 : i32
    %c0_i32_0 = arith.constant 0 : i32
    %c0_i32_1 = arith.constant 0 : i32
    return %c0_i32, %c0_i32_0 : i32, i32
  }
  func.func @transform_7(%arg0: i32) -> (i32, i32) {
    %c0_i32 = arith.constant 0 : i32
    %c0_i32_0 = arith.constant 0 : i32
    return %arg0, %c0_i32 : i32, i32
  }
}

module attributes {stable_mosaic.version = 11 : i64} {
  func.func @proj_kernel(%arg0: i32, %arg1: i32, %arg2: memref<16x128xbf16, #tpu.memory_space<vmem>>, %arg3: memref<1x128xf32, #tpu.memory_space<vmem>>, %arg4: memref<128x128xbf16, #tpu.memory_space<vmem>>, %arg5: memref<16x128xbf16, #tpu.memory_space<vmem>>) attributes {dimension_semantics = [#tpu.dimension_semantics<parallel>, #tpu.dimension_semantics<arbitrary>], iteration_bounds = array<i64: 2, 2>, scalar_prefetch = 0 : i64, scratch_operands = 0 : i64, tpu.core_type = #tpu.core_type<tc>, window_params = [{transform_indices = @transform_0, window_bounds = array<i64: 16, 128>}, {transform_indices = @transform_1, window_bounds = array<i64: 1, 128>}, {transform_indices = @transform_2, window_bounds = array<i64: 128, 128>}, {transform_indices = @transform_3, window_bounds = array<i64: 16, 128>}]} {
    %c0 = arith.constant 0 : index
    %c0_0 = arith.constant 0 : index
    %0 = vector.load %arg2[%c0, %c0_0] : memref<16x128xbf16, #tpu.memory_space<vmem>>, vector<16x128xbf16>
    %c0_1 = arith.constant 0 : index
    %c0_2 = arith.constant 0 : index
    %1 = vector.load %arg4[%c0_1, %c0_2] : memref<128x128xbf16, #tpu.memory_space<vmem>>, vector<128x128xbf16>
    %cst = arith.constant dense<0.000000e+00> : vector<16x128xf32>
    %2 = tpu.matmul %0, %1, %cst {dimension_numbers = #tpu.dot_dimension_numbers<[1], [0], [0], [1], [0, 0, 1, 1], [], []>} : vector<16x128xbf16>, vector<128x128xbf16>, vector<16x128xf32> -> vector<16x128xf32>
    %c0_3 = arith.constant 0 : index
    %c0_4 = arith.constant 0 : index
    %3 = vector.load %arg3[%c0_3, %c0_4] : memref<1x128xf32, #tpu.memory_space<vmem>>, vector<1x128xf32>
    %4 = vector.broadcast %3 : vector<1x128xf32> to vector<16x128xf32>
    %5 = arith.mulf %2, %4 : vector<16x128xf32>
    %6 = arith.truncf %5 : vector<16x128xf32> to vector<16x128xbf16>
    %c0_5 = arith.constant 0 : index
    %c0_6 = arith.constant 0 : index
    %7 = vector.load %arg5[%c0_5, %c0_6] : memref<16x128xbf16, #tpu.memory_space<vmem>>, vector<16x128xbf16>
    tpu.vector_store %arg5[%c0_5, %c0_6], %6 {strides = array<i32>} : memref<16x128xbf16, #tpu.memory_space<vmem>>, vector<16x128xbf16>,
    return
  }
  func.func @transform_0(%arg0: i32, %arg1: i32) -> (i32, i32) {
    %c0_i32 = arith.constant 0 : i32
    %c0_i32_0 = arith.constant 0 : i32
    return %arg1, %c0_i32 : i32, i32
  }
  func.func @transform_1(%arg0: i32, %arg1: i32) -> (i32, i32) {
    %c0_i32 = arith.constant 0 : i32
    %c0_i32_0 = arith.constant 0 : i32
    return %c0_i32, %arg0 : i32, i32
  }
  func.func @transform_2(%arg0: i32, %arg1: i32) -> (i32, i32) {
    %c0_i32 = arith.constant 0 : i32
    %c0_i32_0 = arith.constant 0 : i32
    return %c0_i32, %arg0 : i32, i32
  }
  func.func @transform_3(%arg0: i32, %arg1: i32) -> (i32, i32) {
    %c0_i32 = arith.constant 0 : i32
    return %arg1, %arg0 : i32, i32
  }
}

module attributes {stable_mosaic.version = 11 : i64} {
  func.func @mlp_kernel(%arg0: i32, %arg1: memref<16x128xbf16, #tpu.memory_space<vmem>>, %arg2: memref<128x128xbf16, #tpu.memory_space<vmem>>, %arg3: memref<1x128xf32, #tpu.memory_space<vmem>>, %arg4: memref<128x128xbf16, #tpu.memory_space<vmem>>, %arg5: memref<1x128xf32, #tpu.memory_space<vmem>>, %arg6: memref<128x128xbf16, #tpu.memory_space<vmem>>, %arg7: memref<1x128xf32, #tpu.memory_space<vmem>>, %arg8: memref<16x128xbf16, #tpu.memory_space<vmem>>) attributes {dimension_semantics = [#tpu.dimension_semantics<parallel>], iteration_bounds = array<i64: 2>, scalar_prefetch = 0 : i64, scratch_operands = 0 : i64, tpu.core_type = #tpu.core_type<tc>, window_params = [{transform_indices = @transform_0, window_bounds = array<i64: 16, 128>}, {pipeline_mode = #tpu.pipeline_mode<synchronous>, transform_indices = @transform_1, window_bounds = array<i64: 128, 128>}, {pipeline_mode = #tpu.pipeline_mode<synchronous>, transform_indices = @transform_2, window_bounds = array<i64: 1, 128>}, {pipeline_mode = #tpu.pipeline_mode<synchronous>, transform_indices = @transform_3, window_bounds = array<i64: 128, 128>}, {pipeline_mode = #tpu.pipeline_mode<synchronous>, transform_indices = @transform_4, window_bounds = array<i64: 1, 128>}, {pipeline_mode = #tpu.pipeline_mode<synchronous>, transform_indices = @transform_5, window_bounds = array<i64: 128, 128>}, {pipeline_mode = #tpu.pipeline_mode<synchronous>, transform_indices = @transform_6, window_bounds = array<i64: 1, 128>}, {transform_indices = @transform_7, window_bounds = array<i64: 16, 128>}]} {
    %c0 = arith.constant 0 : index
    %c0_0 = arith.constant 0 : index
    %0 = vector.load %arg1[%c0, %c0_0] : memref<16x128xbf16, #tpu.memory_space<vmem>>, vector<16x128xbf16>
    %c0_1 = arith.constant 0 : index
    %c0_2 = arith.constant 0 : index
    %1 = vector.load %arg2[%c0_1, %c0_2] : memref<128x128xbf16, #tpu.memory_space<vmem>>, vector<128x128xbf16>
    %cst = arith.constant dense<0.000000e+00> : vector<16x128xf32>
    %2 = tpu.matmul %0, %1, %cst {dimension_numbers = #tpu.dot_dimension_numbers<[1], [0], [0], [1], [0, 0, 1, 1], [], []>} : vector<16x128xbf16>, vector<128x128xbf16>, vector<16x128xf32> -> vector<16x128xf32>
    %c0_3 = arith.constant 0 : index
    %c0_4 = arith.constant 0 : index
    %3 = vector.load %arg3[%c0_3, %c0_4] : memref<1x128xf32, #tpu.memory_space<vmem>>, vector<1x128xf32>
    %4 = vector.broadcast %3 : vector<1x128xf32> to vector<16x128xf32>
    %5 = arith.addf %2, %4 : vector<16x128xf32>
    %cst_5 = arith.constant 0.000000e+00 : f32
    %6 = vector.broadcast %cst_5 : f32 to vector<16x128xf32>
    %7 = arith.cmpf ogt, %5, %6 : vector<16x128xf32>
    %8 = math.exp %5 : vector<16x128xf32>
    %cst_6 = arith.constant 1.000000e+00 : f32
    %9 = vector.broadcast %cst_6 : f32 to vector<16x128xf32>
    %10 = arith.subf %8, %9 : vector<16x128xf32>
    %cst_7 = arith.constant 1.67326319 : f32
    %11 = vector.broadcast %cst_7 : f32 to vector<16x128xf32>
    %12 = arith.mulf %11, %10 : vector<16x128xf32>
    %13 = arith.select %7, %5, %12 : vector<16x128xi1>, vector<16x128xf32>
    %cst_8 = arith.constant 1.05070102 : f32
    %14 = vector.broadcast %cst_8 : f32 to vector<16x128xf32>
    %15 = arith.mulf %14, %13 : vector<16x128xf32>
    %16 = arith.truncf %15 : vector<16x128xf32> to vector<16x128xbf16>
    %c0_9 = arith.constant 0 : index
    %c0_10 = arith.constant 0 : index
    %17 = vector.load %arg4[%c0_9, %c0_10] : memref<128x128xbf16, #tpu.memory_space<vmem>>, vector<128x128xbf16>
    %cst_11 = arith.constant dense<0.000000e+00> : vector<16x128xf32>
    %18 = tpu.matmul %16, %17, %cst_11 {dimension_numbers = #tpu.dot_dimension_numbers<[1], [0], [0], [1], [0, 0, 1, 1], [], []>} : vector<16x128xbf16>, vector<128x128xbf16>, vector<16x128xf32> -> vector<16x128xf32>
    %c0_12 = arith.constant 0 : index
    %c0_13 = arith.constant 0 : index
    %19 = vector.load %arg5[%c0_12, %c0_13] : memref<1x128xf32, #tpu.memory_space<vmem>>, vector<1x128xf32>
    %20 = vector.broadcast %19 : vector<1x128xf32> to vector<16x128xf32>
    %21 = arith.addf %18, %20 : vector<16x128xf32>
    %cst_14 = arith.constant 0.000000e+00 : f32
    %22 = vector.broadcast %cst_14 : f32 to vector<16x128xf32>
    %23 = arith.cmpf ogt, %21, %22 : vector<16x128xf32>
    %24 = math.exp %21 : vector<16x128xf32>
    %cst_15 = arith.constant 1.000000e+00 : f32
    %25 = vector.broadcast %cst_15 : f32 to vector<16x128xf32>
    %26 = arith.subf %24, %25 : vector<16x128xf32>
    %cst_16 = arith.constant 1.67326319 : f32
    %27 = vector.broadcast %cst_16 : f32 to vector<16x128xf32>
    %28 = arith.mulf %27, %26 : vector<16x128xf32>
    %29 = arith.select %23, %21, %28 : vector<16x128xi1>, vector<16x128xf32>
    %cst_17 = arith.constant 1.05070102 : f32
    %30 = vector.broadcast %cst_17 : f32 to vector<16x128xf32>
    %31 = arith.mulf %30, %29 : vector<16x128xf32>
    %32 = arith.truncf %31 : vector<16x128xf32> to vector<16x128xbf16>
    %c0_18 = arith.constant 0 : index
    %c0_19 = arith.constant 0 : index
    %33 = vector.load %arg6[%c0_18, %c0_19] : memref<128x128xbf16, #tpu.memory_space<vmem>>, vector<128x128xbf16>
    %cst_20 = arith.constant dense<0.000000e+00> : vector<16x128xf32>
    %34 = tpu.matmul %32, %33, %cst_20 {dimension_numbers = #tpu.dot_dimension_numbers<[1], [0], [0], [1], [0, 0, 1, 1], [], []>} : vector<16x128xbf16>, vector<128x128xbf16>, vector<16x128xf32> -> vector<16x128xf32>
    %c0_21 = arith.constant 0 : index
    %c0_22 = arith.constant 0 : index
    %35 = vector.load %arg7[%c0_21, %c0_22] : memref<1x128xf32, #tpu.memory_space<vmem>>, vector<1x128xf32>
    %36 = vector.broadcast %35 : vector<1x128xf32> to vector<16x128xf32>
    %37 = arith.addf %34, %36 : vector<16x128xf32>
    %38 = arith.mulf %37, %37 : vector<16x128xf32>
    %cst_23 = arith.constant dense<0.000000e+00> : vector<16xf32>
    %39 = vector.multi_reduction <add>, %38, %cst_23 [1] : vector<16x128xf32> to vector<16xf32>
    %40 = vector.shape_cast %39 : vector<16xf32> to vector<16x1xf32>
    %cst_24 = arith.constant 1.000000e-24 : f32
    %41 = vector.broadcast %cst_24 : f32 to vector<16x1xf32>
    %42 = arith.maximumf %40, %41 : vector<16x1xf32>
    %43 = math.rsqrt %42 : vector<16x1xf32>
    %44 = vector.broadcast %43 : vector<16x1xf32> to vector<16x128xf32>
    %45 = arith.mulf %37, %44 : vector<16x128xf32>
    %46 = arith.truncf %45 : vector<16x128xf32> to vector<16x128xbf16>
    %c0_25 = arith.constant 0 : index
    %c0_26 = arith.constant 0 : index
    %47 = vector.load %arg8[%c0_25, %c0_26] : memref<16x128xbf16, #tpu.memory_space<vmem>>, vector<16x128xbf16>
    tpu.vector_store %arg8[%c0_25, %c0_26], %46 {strides = array<i32>} : memref<16x128xbf16, #tpu.memory_space<vmem>>, vector<16x128xbf16>,
    return
  }
  func.func @transform_0(%arg0: i32) -> (i32, i32) {
    %c0_i32 = arith.constant 0 : i32
    %c0_i32_0 = arith.constant 0 : i32
    return %arg0, %c0_i32 : i32, i32
  }
  func.func @transform_1(%arg0: i32) -> (i32, i32) {
    %c0_i32 = arith.constant 0 : i32
    %c0_i32_0 = arith.constant 0 : i32
    %c0_i32_1 = arith.constant 0 : i32
    return %c0_i32, %c0_i32_0 : i32, i32
  }
  func.func @transform_2(%arg0: i32) -> (i32, i32) {
    %c0_i32 = arith.constant 0 : i32
    %c0_i32_0 = arith.constant 0 : i32
    %c0_i32_1 = arith.constant 0 : i32
    return %c0_i32, %c0_i32_0 : i32, i32
  }
  func.func @transform_3(%arg0: i32) -> (i32, i32) {
    %c0_i32 = arith.constant 0 : i32
    %c0_i32_0 = arith.constant 0 : i32
    %c0_i32_1 = arith.constant 0 : i32
    return %c0_i32, %c0_i32_0 : i32, i32
  }
  func.func @transform_4(%arg0: i32) -> (i32, i32) {
    %c0_i32 = arith.constant 0 : i32
    %c0_i32_0 = arith.constant 0 : i32
    %c0_i32_1 = arith.constant 0 : i32
    return %c0_i32, %c0_i32_0 : i32, i32
  }
  func.func @transform_5(%arg0: i32) -> (i32, i32) {
    %c0_i32 = arith.constant 0 : i32
    %c0_i32_0 = arith.constant 0 : i32
    %c0_i32_1 = arith.constant 0 : i32
    return %c0_i32, %c0_i32_0 : i32, i32
  }
  func.func @transform_6(%arg0: i32) -> (i32, i32) {
    %c0_i32 = arith.constant 0 : i32
    %c0_i32_0 = arith.constant 0 : i32
    %c0_i32_1 = arith.constant 0 : i32
    return %c0_i32, %c0_i32_0 : i32, i32
  }
  func.func @transform_7(%arg0: i32) -> (i32, i32) {
    %c0_i32 = arith.constant 0 : i32
    %c0_i32_0 = arith.constant 0 : i32
    return %arg0, %c0_i32 : i32, i32
  }
}

module attributes {stable_mosaic.version = 11 : i64} {
  func.func @proj_kernel(%arg0: i32, %arg1: i32, %arg2: memref<16x128xbf16, #tpu.memory_space<vmem>>, %arg3: memref<1x128xf32, #tpu.memory_space<vmem>>, %arg4: memref<128x128xbf16, #tpu.memory_space<vmem>>, %arg5: memref<16x128xbf16, #tpu.memory_space<vmem>>) attributes {dimension_semantics = [#tpu.dimension_semantics<parallel>, #tpu.dimension_semantics<arbitrary>], iteration_bounds = array<i64: 2, 2>, scalar_prefetch = 0 : i64, scratch_operands = 0 : i64, tpu.core_type = #tpu.core_type<tc>, window_params = [{transform_indices = @transform_0, window_bounds = array<i64: 16, 128>}, {transform_indices = @transform_1, window_bounds = array<i64: 1, 128>}, {transform_indices = @transform_2, window_bounds = array<i64: 128, 128>}, {transform_indices = @transform_3, window_bounds = array<i64: 16, 128>}]} {
    %c0 = arith.constant 0 : index
    %c0_0 = arith.constant 0 : index
    %0 = vector.load %arg2[%c0, %c0_0] : memref<16x128xbf16, #tpu.memory_space<vmem>>, vector<16x128xbf16>
    %c0_1 = arith.constant 0 : index
    %c0_2 = arith.constant 0 : index
    %1 = vector.load %arg4[%c0_1, %c0_2] : memref<128x128xbf16, #tpu.memory_space<vmem>>, vector<128x128xbf16>
    %cst = arith.constant dense<0.000000e+00> : vector<16x128xf32>
    %2 = tpu.matmul %0, %1, %cst {dimension_numbers = #tpu.dot_dimension_numbers<[1], [0], [0], [1], [0, 0, 1, 1], [], []>} : vector<16x128xbf16>, vector<128x128xbf16>, vector<16x128xf32> -> vector<16x128xf32>
    %c0_3 = arith.constant 0 : index
    %c0_4 = arith.constant 0 : index
    %3 = vector.load %arg3[%c0_3, %c0_4] : memref<1x128xf32, #tpu.memory_space<vmem>>, vector<1x128xf32>
    %4 = vector.broadcast %3 : vector<1x128xf32> to vector<16x128xf32>
    %5 = arith.mulf %2, %4 : vector<16x128xf32>
    %6 = arith.truncf %5 : vector<16x128xf32> to vector<16x128xbf16>
    %c0_5 = arith.constant 0 : index
    %c0_6 = arith.constant 0 : index
    %7 = vector.load %arg5[%c0_5, %c0_6] : memref<16x128xbf16, #tpu.memory_space<vmem>>, vector<16x128xbf16>
    tpu.vector_store %arg5[%c0_5, %c0_6], %6 {strides = array<i32>} : memref<16x128xbf16, #tpu.memory_space<vmem>>, vector<16x128xbf16>,
    return
  }
  func.func @transform_0(%arg0: i32, %arg1: i32) -> (i32, i32) {
    %c0_i32 = arith.constant 0 : i32
    %c0_i32_0 = arith.constant 0 : i32
    return %arg1, %c0_i32 : i32, i32
  }
  func.func @transform_1(%arg0: i32, %arg1: i32) -> (i32, i32) {
    %c0_i32 = arith.constant 0 : i32
    %c0_i32_0 = arith.constant 0 : i32
    return %c0_i32, %arg0 : i32, i32
  }
  func.func @transform_2(%arg0: i32, %arg1: i32) -> (i32, i32) {
    %c0_i32 = arith.constant 0 : i32
    %c0_i32_0 = arith.constant 0 : i32
    return %c0_i32, %arg0 : i32, i32
  }
  func.func @transform_3(%arg0: i32, %arg1: i32) -> (i32, i32) {
    %c0_i32 = arith.constant 0 : i32
    return %arg1, %arg0 : i32, i32
  }
}

</mosaic_0001>

<bundles_post_ra>
// kernel: head_forward.3
= control target key start
LH: loop header
LB: loop body
LE: loop exit
PB: predicated region body
PF: predicated region fallthrough
CT: control target
= control target key end

     0   :  { %8 = vsyncpa [#allocation4], 0  ;;  %s1072_s0 = inlined_call_operand.vmem [shape: bf16[32,128], index: 0, kind: input, shape index: {}]   ;;  %s1073_s1 = inlined_call_operand.vmem [shape: f32[1,256], index: 1, kind: input, shape index: {}]   ;;  %s1074_s2 = inlined_call_operand.vmem [shape: bf16[128,256], index: 2, kind: input, shape index: {}]   ;;  %s1075_s3 = inlined_call_operand.hbm [shape: bf16[32,256], index: 3, kind: output, shape index: {}]  }
   0x1   :  { %10 = vsyncpa [#allocation4 + $0x1], 0  ;;  %s877_s12 = smov 0   ;;  %s879_s13 = smov 0  }
   0x2   :  { %s881_s14 = smov 0   ;;  %s883_s15 = smov 0  }
   0x3   :  { %s885_s16 = smov 0   ;;  %s887_s17 = smov 0  }
   0x4   :  { %s889_s18 = smov 0   ;;  %s891_s19 = smov 0  }
   0x5   :  { %s893_s20 = smov 0   ;;  %s895_s21 = smov 0  }
   0x6 LB: > { %s574_s22 = sadd.s32 4294967295, %s849_s21   ;;  %s575_s23 = sadd.s32 4294967294, %s849_s21   ;;  %s849_s21 = sphi %s895_s21, %s16_s21   ;;  %s845_s20 = sphi %s893_s20, %s1087_s20   ;;  %s841_s19 = sphi %s891_s19, %s1086_s19   ;;  %s837_s18 = sphi %s889_s18, %s1085_s18   ;;  %s833_s17 = sphi %s887_s17, %s1084_s17   ;;  %s829_s16 = sphi %s885_s16, %s1083_s16   ;;  %s825_s15 = sphi %s883_s15, %s1082_s15   ;;  %s821_s14 = sphi %s881_s14, %s1081_s14   ;;  %s817_s13 = sphi %s879_s13, %s1080_s13   ;;  %s813_s12 = sphi %s877_s12, %s1079_s12  }
   0x7   : > { %s25_s24 = sadd.s32 1, %s841_s19  ;;  %s28_s25 = sadd.s32 1, %s845_s20 }
   0x8   : > { %p26_p0 = scmp.ge.s32.totalorder %s25_s24, 2  ;;  %s87_s26 = sadd.s32 1, %s829_s16 }
   0x9   : > { %p94_p1 = scmp.ne.s32.totalorder %s829_s16, %s825_s15  ;;  %p95_p2 = scmp.eq.s32.totalorder %s849_s21, 0 }
   0xa   : > { %s1089_s24 = smov (%p26_p0, %s25_s24), 0  ;;  %s1091_s25 = smov (!%p26_p0, %s28_s25), %s845_s20 }
   0xb   : > { %p938_p3 = por %p95_p2, %p94_p1  ;;  %s110_s28 = ssub.s32 %s841_s19, %s1089_s24 }
   0xc   : > { %p30_p4 = scmp.ge.s32.totalorder %s1091_s25, 2  ;;  %s115_s29 = sadd.s32 1, %s821_s14 }
   0xd   : > { %p125_p5 = scmp.ne.s32.totalorder %s821_s14, %s817_s13  ;;  %p126_p6 = scmp.eq.s32.totalorder %s574_s22, 3 }
   0xe   : > { %s1093_s25 = smov (%p30_p4, %s1091_s25), 0  ;;  %p131_p8 = scmp.ne.s32.totalorder %s817_s13, %s813_s12 }
   0xf   : > { %p949_p7 = por %p126_p6, %p125_p5  ;;  %s84_s4 = ssub.s32 %s845_s20, %s1093_s25 }
  0x10   : > { %p132_p9 = scmp.eq.s32.totalorder %s575_s23, 3  ;;  %p85_p10 = scmp.eq.s32.totalorder %s84_s4, 0 }
  0x11   : > { %s112_s5 = sor.u32 %s110_s28, %s84_s4  ;;  %p577_p13 = scmp.ge.s32.totalorder %s849_s21, 4 }
  0x12   : > { %p113_p11 = scmp.eq.s32.totalorder %s112_s5, 0  ;;  %p957_p12 = por %p132_p9, %p131_p8 }
  0x13   : > { %s962_s7 = scalar_select %p85_p10, %s829_s16, %s87_s26  }
  0x14   : > { %s965_s8 = scalar_select %p113_p11, %s821_s14, %s115_s29  }
  0x15   : > { %148 = sbr.rel (%p577_p13) target bundleno = 40 (0x28), region = 16 }
  0x1a   : > { %166 = sbr.rel (!%p938_p3) target bundleno = 40 (0x28), region = 28  ;;  %s168_s9 = sand.u32 (%p938_p3), 1, %s829_s16  }
  0x1b   : > { %s579_s10 = sshll.u32 (%p938_p3), %s845_s20, 2  ;;  %s578_s11 = sshll.u32 (%p938_p3), %s168_s9, 6 }
  0x1c   : > { %s975_s28 = scalar_lea.vmem (%p938_p3), %s1074_s2, %s579_s10  ;;  %s170_s26 = scalar_lea.vmem (%p938_p3), [#allocation2], %s578_s11 }
  0x1d   : > { %v189_v0 = vld [vmem:[%s975_s28] sm:$0xf] (%p938_p3)  ;;  %v191_v1 = vld [vmem:[%s975_s28 + $0x8] sm:$0xf] (%p938_p3)  ;;  %v193_v2 = vld [vmem:[%s975_s28 + $0x10] sm:$0xf] (%p938_p3) }
  0x1e   : > { %190 = vst [vmem:[%s170_s26] sm:$0xf] (%p938_p3), %v189_v0  ;;  %192 = vst [vmem:[%s170_s26 + $0x4] sm:$0xf] (%p938_p3), %v191_v1  ;;  %v195_v3 = vld [vmem:[%s975_s28 + $0x18] sm:$0xf] (%p938_p3) }
  0x1f   : > { %v197_v4 = vld [vmem:[%s975_s28 + $0x20] sm:$0xf]  ;;  %194 = vst [vmem:[%s170_s26 + $0x8] sm:$0xf] %v193_v2  ;;  %196 = vst [vmem:[%s170_s26 + $0xc] sm:$0xf] %v195_v3 }
  0x20   : > { %198 = vst [vmem:[%s170_s26 + $0x10] sm:$0xf] %v197_v4  ;;  %v199_v5 = vld [vmem:[%s975_s28 + $0x28] sm:$0xf]  ;;  %v201_v6 = vld [vmem:[%s975_s28 + $0x30] sm:$0xf] }
  0x21   : > { %v203_v7 = vld [vmem:[%s975_s28 + $0x38] sm:$0xf]  ;;  %200 = vst [vmem:[%s170_s26 + $0x14] sm:$0xf] %v199_v5  ;;  %202 = vst [vmem:[%s170_s26 + $0x18] sm:$0xf] %v201_v6 }
  0x22   : > { %204 = vst [vmem:[%s170_s26 + $0x1c] sm:$0xf] %v203_v7  ;;  %v205_v8 = vld [vmem:[%s975_s28 + $0x40] sm:$0xf]  ;;  %v207_v9 = vld [vmem:[%s975_s28 + $0x48] sm:$0xf] }
  0x23   : > { %v209_v10 = vld [vmem:[%s975_s28 + $0x50] sm:$0xf]  ;;  %206 = vst [vmem:[%s170_s26 + $0x20] sm:$0xf] %v205_v8  ;;  %208 = vst [vmem:[%s170_s26 + $0x24] sm:$0xf] %v207_v9 }
  0x24   : > { %210 = vst [vmem:[%s170_s26 + $0x28] sm:$0xf] %v209_v10  ;;  %v211_v11 = vld [vmem:[%s975_s28 + $0x58] sm:$0xf]  ;;  %v213_v12 = vld [vmem:[%s975_s28 + $0x60] sm:$0xf] }
  0x25   : > { %v215_v13 = vld [vmem:[%s975_s28 + $0x68] sm:$0xf]  ;;  %212 = vst [vmem:[%s170_s26 + $0x2c] sm:$0xf] %v211_v11  ;;  %214 = vst [vmem:[%s170_s26 + $0x30] sm:$0xf] %v213_v12 }
  0x26   : > { %216 = vst [vmem:[%s170_s26 + $0x34] sm:$0xf] %v215_v13  ;;  %v217_v14 = vld [vmem:[%s975_s28 + $0x70] sm:$0xf]  ;;  %v219_v15 = vld [vmem:[%s975_s28 + $0x78] sm:$0xf] }
  0x27   : > { %218 = vst [vmem:[%s170_s26 + $0x38] sm:$0xf] %v217_v14  ;;  %220 = vst [vmem:[%s170_s26 + $0x3c] sm:$0xf] %v219_v15 }
  0x28 PF: > { %p580_p0 = scmp.ge.s32.totalorder %s849_s21, 1  ;;  %p275_p1 = scmp.lt.s32.totalorder %s849_s21, 5 }
  0x2a   : > { %p276_p2 = pnand %p580_p0, %p275_p1 }
  0x2b   : > { %s282_s27 = sand.u32 (!%p276_p2), 1, %s825_s15   ;;  %s583_s29 = sshll.u32 (!%p276_p2), %s833_s17, 1 }
  0x2c   : > { %279 = sbr.rel (%p276_p2) target bundleno = 298 (0x12a), region = 69  ;;  %s581_s4 = sshll.u32 (!%p276_p2), %s282_s27, 6 }
  0x2d   : > { %p314_p3 = scmp.lt.s32.totalorder (!%p276_p2), %s583_s29, 3  ;;  %s284_s5 = scalar_lea.vmem (!%p276_p2), [#allocation2], %s581_s4 }
  0x2e   : > { %p319_p4 = scmp.lt.s32.totalorder (!%p276_p2), %s837_s18, 1  ;;  %s310_s22 = sand.u32 (!%p276_p2), 1, %s817_s13  }
  0x2f   : > { %s582_s28 = sshll.u32 (!%p276_p2), %s310_s22, 3  ;;  %s605_s26 = sshll.u32 (!%p276_p2), %s833_s17, 2 }
  0x30   : > { %s312_s10 = scalar_lea.vmem (!%p276_p2), [#allocation3], %s582_s28 }
  0x31   : > { %v851_v16 = vmov 0.0   ;;  %vm852_vm0 = vmmov 0   ;;  %v732_v17 = vld [vmem:[%s284_s5 + $0x38] sm:$0xff]   ;;  %s1095_s29 = smov (!%p314_p3, %s583_s29), 3  ;;  %v733_v18 = vld [vmem:[%s284_s5 + $0x30] sm:$0xff]   ;;  %v734_v19 = vld [vmem:[%s284_s5 + $0x28] sm:$0xff]  }
  0x32   : > { %620 = vmatprep.subr.bf16.mxu0 %v851_v16  ;;  %636 = vmatprep.mubr.msk.bf16.mxu0 %vm852_vm0, %v851_v16  ;;  %s584_s9 = sshll.u32 %s1095_s29, 2  ;;  %v735_v20 = vld [vmem:[%s284_s5 + $0x20] sm:$0xff]   ;;  %v736_v21 = vld [vmem:[%s284_s5 + $0x18] sm:$0xff]   ;;  %v737_v22 = vld [vmem:[%s284_s5 + $0x10] sm:$0xff]  }
  0x33   : > { %621 = vmatpush3.bf16.msra.mxu0 %v732_v17  ;;  %s317_s15 = scalar_lea.vmem %s1072_s0, %s584_s9  ;;  %v738_v23 = vld [vmem:[%s284_s5 + $0x8] sm:$0xff]   ;;  %v739_v24 = vld [vmem:[%s284_s5] sm:$0xff]   ;;  %s469_s9 = sadd.s32 %s837_s18, %s605_s26 }
  0x34   : > { %622 = vmatprep.subr.bf16.mxu0 %v851_v16  ;;  %v740_v25 = vld [vmem:[%s317_s15] sm:$0xff]   ;;  %s320_s23 = scalar_select %p319_p4, %s837_s18, 1 }
  0x35   : > { %s472_s5 = sshll.u32 %s312_s10, 4  ;;  %s600_s11 = sshll.u32 %s469_s9, 6  ;;  %s1008_s5 = int_to_ptr.vmem [resolvable:$true] %s472_s5 }
  0x36   : > { %s321_s4 = scalar_lea.vmem %s1073_s1, %s320_s23  ;;  %s1013_s23 = scalar_lea.hbm %s1075_s3, %s600_s11 }
  0x37   : > { %623 = vmatpush3.bf16.msra.mxu0 %v733_v18  ;;  %v594_v27 = vld [vmem:[%s321_s4] ss:$0 sm:$0xff]  ;;  %s1015_s18 = scalar_lea.sflag [#allocation4], %s310_s22  ;;  %s741_s28 = scalar_lea.vmem %s1008_s5, 128 }
  0x38   : > { %624 = vmatprep.subr.bf16.mxu0 %v851_v16  ;;  %p742_p5 = scmp.ne.s32.totalorder %s1008_s5, %s741_s28  ;;  %s853_s26 = smov [#allocation3]  }
  0x39   : > { %s745_s27 = sshll.u32 %s853_s26, 4  ;;  %s746_s27 = int_to_ptr.vmem [resolvable:$false] %s745_s27 }
  0x3a   : > { %p743_p6 = pnand %p742_p5, %p949_p7  ;;  %s747_s29 = scalar_lea.vmem %s746_s27, 256 }
  0x3b   : > { %625 = vmatpush3.bf16.msra.mxu0 %v734_v19  ;;  %p748_p9 = scmp.lt.s32.totalorder %s1008_s5, %s746_s27  ;;  %p749_p10 = scmp.lt.s32.totalorder %s747_s29, %s741_s28 }
  0x3c   : > { %626 = vmatprep.subr.bf16.mxu0 %v851_v16  ;;  %p744_p8 = pneg %p743_p6 }
  0x3d   : > { %p750_p11 = por %p749_p10, %p748_p9 }
  0x3f   : > { %627 = vmatpush3.bf16.msra.mxu0 %v735_v20  ;;  %p751_p13 = pnand %p750_p11, %p744_p8 }
  0x40   : > { %628 = vmatprep.subr.bf16.mxu0 %v851_v16 }
  0x43   : > { %629 = vmatpush3.bf16.msra.mxu0 %v736_v21 }
  0x44   : > { %630 = vmatprep.subr.bf16.mxu0 %v851_v16 }
  0x47   : > { %631 = vmatpush3.bf16.msra.mxu0 %v737_v22 }
  0x48   : > { %632 = vmatprep.subr.bf16.mxu0 %v851_v16 }
  0x4b   : > { %633 = vmatpush3.bf16.msra.mxu0 %v738_v23 }
  0x4c   : > { %634 = vmatprep.subr.bf16.mxu0 %v851_v16 }
  0x4f   : > { %635 = vmatpush3.bf16.msra.mxu0 %v739_v24 }
  0x52   : > { %637 = vmatmul.mubr.bf16.vlgmr.msra.gmra.mxu0 %v740_v25 }
 0x112   : > { %v430_v26 = vpop.f32.mrf.mxu0 }
 0x113   : > { %v444_v30 = vmul.f32 %v594_v27, %v430_v26 }
 0x114   : > { %v638_v28 = vpop.f32.mrf.mxu0 }
 0x116   : > { %v433_v29 = vpop.f32.mrf.mxu0 }
 0x117   : > { %v445_v31 = vmul.f32 %v594_v27, %v433_v29 }
 0x118   : > { %v639_v32 = vpop.f32.mrf.mxu0 }
 0x119   : > { %v609_v33 = vpack.c.bf16 %v445_v31, %v444_v30 }
 0x11b   : > { %610 = vst [vmem:[%s312_s10] sm:$0xff] %v609_v33  }
 0x11c   : > { %754 = shalt.err (!%p751_p13)
}
 0x11d   : > { %s755_s22 = scalar_lea.hbm %s1013_s23, 128  ;;  %s759_s10 = scalar_lea.hbm %s1075_s3, 512 }
 0x11e   : > { %p756_p0 = scmp.ne.s32.totalorder %s1013_s23, %s755_s22  ;;  %p760_p3 = scmp.lt.s32.totalorder %s1013_s23, %s1075_s3 }
 0x11f   : > { %p761_p4 = scmp.lt.s32.totalorder %s759_s10, %s755_s22 }
 0x120   : > { %p757_p1 = pnand %p756_p0, %p949_p7 }
 0x121   : > { %p762_p5 = por %p761_p4, %p760_p3 }
 0x122   : > { %p758_p2 = pneg %p757_p1 }
 0x124   : > { %p763_p6 = pnand %p762_p5, %p758_p2 }
 0x126   : > { %766 = shalt.err (!%p763_p6)
}
 0x127   : > { %s854_s15 = smov 64   ;;  %s855_s28 = smov 128  }
 0x128   : > { %s856_s26 = smov 4  }
 0x129   : > { %640 = dma.vmem_to_hbm [thread:$0]  (%p949_p7), %s1008_s5, 128, %s1013_s23, %s1015_s18, %s854_s15, %s855_s28, %s856_s26  }
 0x12a PF: > { %p646_p8 = scmp.ge.s32.totalorder %s849_s21, 2  ;;  %s487_s27 = sand.u32 1, %s813_s12  }
 0x12b   : > { %s488_s29 = scalar_lea.sflag [#allocation4], %s487_s27 }
 0x12c   : > { %p643_p9 = pnand %p646_p8, %p957_p12 }
 0x12e   : > { %p644_p10 = pneg %p643_p9 }
 0x130   : > { %808 = dma.done.wait (%p644_p10), %s488_s29, 128  }
 0x131   : > { %810 = vsyncadd (%p644_p10), %s488_s29, 4294967168  ;;  %s16_s21 = sadd.s32 1, %s849_s21   ;;  %s1079_s12 = smov %s817_s13 }
 0x132   : > { %p13_p11 = scmp.ge.s32.totalorder %s16_s21, 6   ;;  %s1080_s13 = smov %s821_s14 }
 0x133   : > { %s1081_s14 = smov %s965_s8  ;;  %s1082_s15 = smov %s829_s16 }
 0x134   : > { %s1083_s16 = smov %s962_s7  ;;  %s1084_s17 = smov %s841_s19 }
 0x135   : > { %s1085_s18 = smov %s845_s20  ;;  %s1086_s19 = smov %s1089_s24 }
 0x136   : > { %s1087_s20 = smov %s1093_s25  ;;  %15 = sbr.rel (!%p13_p11) target bundleno = 6 (0x6), region = 119 }
 0x13b   :  { %493 = vsyncpa [#allocation4], 1 }
 0x13c   :  { %495 = vsyncpa [#allocation4 + $0x1], 1 }

// kernel: head_forward.2
= control target key start
LH: loop header
LB: loop body
LE: loop exit
PB: predicated region body
PF: predicated region fallthrough
CT: control target
= control target key end

     0   :  { %s971_s24 = smov 0   ;;  %s1106_s0 = inlined_call_operand.vmem [shape: bf16[32,128], index: 0, kind: input, shape index: {}]   ;;  %s1107_s1 = inlined_call_operand.vmem [shape: bf16[128,128], index: 1, kind: input, shape index: {}]   ;;  %s1108_s2 = inlined_call_operand.vmem [shape: f32[1,128], index: 2, kind: input, shape index: {}]   ;;  %s1109_s3 = inlined_call_operand.vmem [shape: bf16[128,128], index: 3, kind: input, shape index: {}]   ;;  %s1110_s4 = inlined_call_operand.vmem [shape: f32[1,128], index: 4, kind: input, shape index: {}]   ;;  %s1111_s5 = inlined_call_operand.vmem [shape: bf16[128,128], index: 5, kind: input, shape index: {}]   ;;  %s1112_s6 = inlined_call_operand.vmem [shape: f32[1,128], index: 6, kind: input, shape index: {}]   ;;  %s1113_s7 = inlined_call_operand.vmem [shape: bf16[32,128], index: 7, kind: output, shape index: {}]  }
   0x1 LB: > { %s735_s25 = sadd.s32 4294967295, %s927_s24   ;;  %p739_p0 = scmp.ge.s32.totalorder %s927_s24, 1  ;;  %s927_s24 = sphi %s971_s24, %s17_s24  }
   0x2   : > { %p238_p1 = scmp.lt.s32.totalorder %s927_s24, 3 }
   0x4   : > { %p239_p2 = pnand %p739_p0, %p238_p1 }
   0x5   : > { %s740_s30 = sshll.u32 (!%p239_p2), %s735_s25, 1 }
   0x6   : > { %242 = sbr.rel (%p239_p2) target bundleno = 852 (0x354), region = 48  ;;  %p271_p3 = scmp.lt.s32.totalorder (!%p239_p2), %s740_s30, 3 }
   0xb   : > { %v884_v0 = vld [vmem:[%s1107_s1 + $0x38] sm:$0xff]   ;;  %v929_v1 = vmov 0.0   ;;  %v885_v2 = vld [vmem:[%s1107_s1 + $0x30] sm:$0xff]   ;;  %vm930_vm0 = vmmov 0   ;;  %s1115_s30 = smov (!%p271_p3, %s740_s30), 3  ;;  %v886_v3 = vld [vmem:[%s1107_s1 + $0x28] sm:$0xff]  }
   0xc   : > { %814 = vmatprep.subr.bf16.mxu0 %v929_v1  ;;  %834 = vmatprep.subr.bf16.mxu1 %v929_v1  ;;  %s741_s10 = sshll.u32 %s1115_s30, 2  ;;  %v887_v4 = vld [vmem:[%s1107_s1 + $0x20] sm:$0xff]   ;;  %v888_v5 = vld [vmem:[%s1107_s1 + $0x18] sm:$0xff]   ;;  %v889_v6 = vld [vmem:[%s1107_s1 + $0x10] sm:$0xff]  }
   0xd   : > { %815 = vmatpush3.bf16.msra.mxu0 %v884_v0  ;;  %830 = vmatprep.mubr.msk.bf16.mxu0 %vm930_vm0, %v929_v1  ;;  %s274_s13 = scalar_lea.vmem %s1106_s0, %s741_s10  ;;  %v890_v7 = vld [vmem:[%s1107_s1 + $0x8] sm:$0xff]   ;;  %v891_v8 = vld [vmem:[%s1107_s1] sm:$0xff]   ;;  %v893_v10 = vld [vmem:[%s1109_s3 + $0x38] sm:$0xff]   ;;  %s280_s25 = scalar_lea.vmem %s1113_s7, %s741_s10 }
   0xe   : > { %816 = vmatprep.subr.bf16.mxu0 %v929_v1  ;;  %850 = vmatprep.mubr.msk.bf16.mxu1 %vm930_vm0, %v929_v1  ;;  %v892_v9 = vld [vmem:[%s274_s13] sm:$0xff]   ;;  %v894_v11 = vld [vmem:[%s1109_s3 + $0x30] sm:$0xff]   ;;  %v895_v12 = vld [vmem:[%s1109_s3 + $0x28] sm:$0xff]  }
   0xf   : > { %835 = vmatpush3.bf16.msra.mxu1 %v893_v10  ;;  %v896_v13 = vld [vmem:[%s1109_s3 + $0x20] sm:$0xff]   ;;  %v897_v14 = vld [vmem:[%s1109_s3 + $0x18] sm:$0xff]   ;;  %v898_v15 = vld [vmem:[%s1109_s3 + $0x10] sm:$0xff]  }
  0x10   : > { %836 = vmatprep.subr.bf16.mxu1 %v929_v1  ;;  %v899_v16 = vld [vmem:[%s1109_s3 + $0x8] sm:$0xff]   ;;  %v900_v17 = vld [vmem:[%s1109_s3] sm:$0xff]   ;;  %v901_v38 = vld [vmem:[%s1111_s5 + $0x38] sm:$0xff]  }
  0x11   : > { %817 = vmatpush3.bf16.msra.mxu0 %v885_v2  ;;  %v744_v18 = vld [vmem:[%s1108_s2] ss:$0 sm:$0xff]  ;;  %v902_v39 = vld [vmem:[%s1111_s5 + $0x30] sm:$0xff]   ;;  %v903_v40 = vld [vmem:[%s1111_s5 + $0x28] sm:$0xff]  }
  0x12   : > { %818 = vmatprep.subr.bf16.mxu0 %v929_v1  ;;  %v904_v41 = vld [vmem:[%s1111_s5 + $0x20] sm:$0xff]   ;;  %v905_v42 = vld [vmem:[%s1111_s5 + $0x18] sm:$0xff]   ;;  %v906_v43 = vld [vmem:[%s1111_s5 + $0x10] sm:$0xff]  }
  0x13   : > { %837 = vmatpush3.bf16.msra.mxu1 %v894_v11  ;;  %v907_v44 = vld [vmem:[%s1111_s5 + $0x8] sm:$0xff]   ;;  %v908_v45 = vld [vmem:[%s1111_s5] sm:$0xff]  }
  0x14   : > { %838 = vmatprep.subr.bf16.mxu1 %v929_v1  ;;  %v756_v46 = vld [vmem:[%s1110_s4] ss:$0 sm:$0xff] }
  0x15   : > { %819 = vmatpush3.bf16.msra.mxu0 %v886_v3  ;;  %v767_v2 = vld [vmem:[%s1112_s6] ss:$0 sm:$0xff] }
  0x16   : > { %820 = vmatprep.subr.bf16.mxu0 %v929_v1 }
  0x17   : > { %839 = vmatpush3.bf16.msra.mxu1 %v895_v12 }
  0x18   : > { %840 = vmatprep.subr.bf16.mxu1 %v929_v1 }
  0x19   : > { %821 = vmatpush3.bf16.msra.mxu0 %v887_v4 }
  0x1a   : > { %822 = vmatprep.subr.bf16.mxu0 %v929_v1 }
  0x1b   : > { %841 = vmatpush3.bf16.msra.mxu1 %v896_v13 }
  0x1c   : > { %842 = vmatprep.subr.bf16.mxu1 %v929_v1 }
  0x1d   : > { %823 = vmatpush3.bf16.msra.mxu0 %v888_v5 }
  0x1e   : > { %824 = vmatprep.subr.bf16.mxu0 %v929_v1 }
  0x1f   : > { %843 = vmatpush3.bf16.msra.mxu1 %v897_v14 }
  0x20   : > { %844 = vmatprep.subr.bf16.mxu1 %v929_v1 }
  0x21   : > { %825 = vmatpush3.bf16.msra.mxu0 %v889_v6 }
  0x22   : > { %826 = vmatprep.subr.bf16.mxu0 %v929_v1 }
  0x23   : > { %845 = vmatpush3.bf16.msra.mxu1 %v898_v15 }
  0x24   : > { %846 = vmatprep.subr.bf16.mxu1 %v929_v1 }
  0x25   : > { %827 = vmatpush3.bf16.msra.mxu0 %v890_v7 }
  0x26   : > { %828 = vmatprep.subr.bf16.mxu0 %v929_v1 }
  0x27   : > { %847 = vmatpush3.bf16.msra.mxu1 %v899_v16 }
  0x28   : > { %848 = vmatprep.subr.bf16.mxu1 %v929_v1 }
  0x29   : > { %829 = vmatpush3.bf16.msra.mxu0 %v891_v8 }
  0x2a   : > { %854 = vmatprep.subr.bf16.mxu0 %v929_v1 }
  0x2b   : > { %849 = vmatpush3.bf16.msra.mxu1 %v900_v17 }
  0x2c   : > { %831 = vmatmul.mubr.bf16.vlgmr.msra.gmra.mxu0 %v892_v9 }
  0x2d   : > { %870 = vmatprep.mubr.msk.bf16.mxu0 %vm930_vm0, %v929_v1  ;;  %855 = vmatpush3.bf16.msra.mxu0 %v901_v38 }
  0x2e   : > { %856 = vmatprep.subr.bf16.mxu0 %v929_v1 }
  0x31   : > { %857 = vmatpush3.bf16.msra.mxu0 %v902_v39 }
  0x32   : > { %858 = vmatprep.subr.bf16.mxu0 %v929_v1 }
  0x35   : > { %859 = vmatpush3.bf16.msra.mxu0 %v903_v40 }
  0x36   : > { %860 = vmatprep.subr.bf16.mxu0 %v929_v1 }
  0x39   : > { %861 = vmatpush3.bf16.msra.mxu0 %v904_v41 }
  0x3a   : > { %862 = vmatprep.subr.bf16.mxu0 %v929_v1 }
  0x3d   : > { %863 = vmatpush3.bf16.msra.mxu0 %v905_v42 }
  0x3e   : > { %864 = vmatprep.subr.bf16.mxu0 %v929_v1 }
  0x41   : > { %865 = vmatpush3.bf16.msra.mxu0 %v906_v43 }
  0x42   : > { %866 = vmatprep.subr.bf16.mxu0 %v929_v1 }
  0x45   : > { %867 = vmatpush3.bf16.msra.mxu0 %v907_v44 }
  0x46   : > { %868 = vmatprep.subr.bf16.mxu0 %v929_v1 }
  0x49   : > { %869 = vmatpush3.bf16.msra.mxu0 %v908_v45 }
  0xec   : > { %v396_v19 = vpop.f32.mrf.mxu0 }
  0xed   : > { %v397_v20 = vadd.f32 %v744_v18, %v396_v19 }
  0xee   : > { %v832_v21 = vpop.f32.mrf.mxu0 }
  0xef   : > { %v405_v22 = vmul.f32 1.442695, %v397_v20  ;;  %vm403_vm1 = vcmp.gt.f32.partialorder %v397_v20, 0.0 }
  0xf0   : > { %v399_v23 = vpop.f32.mrf.mxu0 }
  0xf1   : > { %909 = vpow2.f32 %v405_v22  ;;  %v400_v24 = vadd.f32 %v744_v18, %v399_v23 }
  0xf2   : > { %v833_v25 = vpop.f32.mrf.mxu0 }
  0xf3   : > { %v407_v26 = vmul.f32 1.442695, %v400_v24  ;;  %vm404_vm2 = vcmp.gt.f32.partialorder %v400_v24, 0.0 }
  0xf5   : > { %911 = vpow2.f32 %v407_v26 }
  0xfe   : > { %v910_v27 = vpop.eup %909 }
  0xff   : > { %v754_v28 = vadd.f32 -1.0, %v910_v27 }
 0x101   : > { %v411_v29 = vmul.f32 1.6732632, %v754_v28 }
 0x102   : > { %v912_v30 = vpop.eup %911 }
 0x103   : > { %v755_v31 = vadd.f32 -1.0, %v912_v30  ;;  %v413_v32 = vsel %vm403_vm1, %v397_v20, %v411_v29 }
 0x104   : > { %v415_v35 = vmul.f32 1.050701, %v413_v32 }
 0x105   : > { %v412_v33 = vmul.f32 1.6732632, %v755_v31 }
 0x107   : > { %v414_v34 = vsel %vm404_vm2, %v400_v24, %v412_v33 }
 0x108   : > { %v416_v36 = vmul.f32 1.050701, %v414_v34 }
 0x10a   : > { %v417_v37 = vpack.c.bf16 %v416_v36, %v415_v35 }
 0x10c   : > { %851 = vmatmul.mubr.bf16.vlgmr.msra.gmra.mxu1 %v417_v37 }
 0x1cc   : > { %v523_v47 = vpop.f32.mrf.mxu1 }
 0x1cd   : > { %v524_v48 = vadd.f32 %v756_v46, %v523_v47 }
 0x1ce   : > { %v852_v49 = vpop.f32.mrf.mxu1 }
 0x1cf   : > { %v532_v50 = vmul.f32 1.442695, %v524_v48  ;;  %vm530_vm3 = vcmp.gt.f32.partialorder %v524_v48, 0.0 }
 0x1d0   : > { %v526_v51 = vpop.f32.mrf.mxu1 }
 0x1d1   : > { %913 = vpow2.f32 %v532_v50  ;;  %v527_v52 = vadd.f32 %v756_v46, %v526_v51 }
 0x1d2   : > { %v853_v53 = vpop.f32.mrf.mxu1 }
 0x1d3   : > { %v534_v54 = vmul.f32 1.442695, %v527_v52  ;;  %vm531_vm4 = vcmp.gt.f32.partialorder %v527_v52, 0.0 }
 0x1d5   : > { %915 = vpow2.f32 %v534_v54 }
 0x1de   : > { %v914_v55 = vpop.eup %913 }
 0x1df   : > { %v765_v56 = vadd.f32 -1.0, %v914_v55 }
 0x1e1   : > { %v538_v57 = vmul.f32 1.6732632, %v765_v56 }
 0x1e2   : > { %v916_v58 = vpop.eup %915 }
 0x1e3   : > { %v766_v59 = vadd.f32 -1.0, %v916_v58  ;;  %v540_v60 = vsel %vm530_vm3, %v524_v48, %v538_v57 }
 0x1e4   : > { %v542_v63 = vmul.f32 1.050701, %v540_v60 }
 0x1e5   : > { %v539_v61 = vmul.f32 1.6732632, %v766_v59 }
 0x1e7   : > { %v541_v62 = vsel %vm531_vm4, %v527_v52, %v539_v61 }
 0x1e8   : > { %v543_v0 = vmul.f32 1.050701, %v541_v62 }
 0x1ea   : > { %v544_v1 = vpack.c.bf16 %v543_v0, %v542_v63 }
 0x1ec   : > { %871 = vmatmul.mubr.bf16.vlgmr.msra.gmra.mxu0 %v544_v1 }
 0x2ac   : > { %v650_v3 = vpop.f32.mrf.mxu0 }
 0x2ad   : > { %v651_v4 = vadd.f32 %v767_v2, %v650_v3 }
 0x2ae   : > { %v872_v5 = vpop.f32.mrf.mxu0 }
 0x2af   : > { %v657_v6 = vmul.f32 %v651_v4, %v651_v4 }
 0x2b0   : > { %v653_v7 = vpop.f32.mrf.mxu0 }
 0x2b1   : > { %v654_v8 = vadd.f32 %v767_v2, %v653_v7  ;;  %659 = vadd.xlane.f32.xlu0 %v657_v6 }
 0x2b2   : > { %v873_v9 = vpop.f32.mrf.mxu0 }
 0x2b3   : > { %v658_v10 = vmul.f32 %v654_v8, %v654_v8 }
 0x2b5   : > { %661 = vadd.xlane.f32.xlu0 %v658_v10 }
 0x33a   : > { %v660_v11 = vpop.xlane.xlu0 %659 }
 0x33b   : > { %v663_v12 = vmax.f32 %v660_v11, 1e-24 }
 0x33d   : > { %917 = vrsqrt.f32 %v663_v12 }
 0x33e   : > { %v662_v13 = vpop.xlane.xlu0 %661 }
 0x33f   : > { %v664_v14 = vmax.f32 %v662_v13, 1e-24 }
 0x341   : > { %919 = vrsqrt.f32 %v664_v14 }
 0x34a   : > { %v918_v15 = vpop.eup %917 }
 0x34b   : > { %v667_v17 = vmul.f32 %v918_v15, %v651_v4 }
 0x34e   : > { %v920_v16 = vpop.eup %919 }
 0x34f   : > { %v668_v18 = vmul.f32 %v920_v16, %v654_v8 }
 0x351   : > { %v785_v19 = vpack.c.bf16 %v668_v18, %v667_v17 }
 0x353   : > { %786 = vst [vmem:[%s280_s25] sm:$0xff] %v785_v19  }
 0x354 PF: > { %s17_s24 = sadd.s32 1, %s927_s24  }
 0x355   : > { %p14_p4 = scmp.ge.s32.totalorder %s17_s24, 4  }
 0x357   :  { %16 = sbr.rel (!%p14_p4) target bundleno = 1 (0x1), region = 78 }

// kernel: head_forward.3
= control target key start
LH: loop header
LB: loop body
LE: loop exit
PB: predicated region body
PF: predicated region fallthrough
CT: control target
= control target key end

     0   :  { %8 = vsyncpa [#allocation4], 0  ;;  %s1072_s0 = inlined_call_operand.vmem [shape: bf16[32,128], index: 0, kind: input, shape index: {}]   ;;  %s1073_s1 = inlined_call_operand.vmem [shape: f32[1,256], index: 1, kind: input, shape index: {}]   ;;  %s1074_s2 = inlined_call_operand.vmem [shape: bf16[128,256], index: 2, kind: input, shape index: {}]   ;;  %s1075_s3 = inlined_call_operand.hbm [shape: bf16[32,256], index: 3, kind: output, shape index: {}]  }
   0x1   :  { %10 = vsyncpa [#allocation4 + $0x1], 0  ;;  %s877_s12 = smov 0   ;;  %s879_s13 = smov 0  }
   0x2   :  { %s881_s14 = smov 0   ;;  %s883_s15 = smov 0  }
   0x3   :  { %s885_s16 = smov 0   ;;  %s887_s17 = smov 0  }
   0x4   :  { %s889_s18 = smov 0   ;;  %s891_s19 = smov 0  }
   0x5   :  { %s893_s20 = smov 0   ;;  %s895_s21 = smov 0  }
   0x6 LB: > { %s574_s22 = sadd.s32 4294967295, %s849_s21   ;;  %s575_s23 = sadd.s32 4294967294, %s849_s21   ;;  %s849_s21 = sphi %s895_s21, %s16_s21   ;;  %s845_s20 = sphi %s893_s20, %s1087_s20   ;;  %s841_s19 = sphi %s891_s19, %s1086_s19   ;;  %s837_s18 = sphi %s889_s18, %s1085_s18   ;;  %s833_s17 = sphi %s887_s17, %s1084_s17   ;;  %s829_s16 = sphi %s885_s16, %s1083_s16   ;;  %s825_s15 = sphi %s883_s15, %s1082_s15   ;;  %s821_s14 = sphi %s881_s14, %s1081_s14   ;;  %s817_s13 = sphi %s879_s13, %s1080_s13   ;;  %s813_s12 = sphi %s877_s12, %s1079_s12  }
   0x7   : > { %s25_s24 = sadd.s32 1, %s841_s19  ;;  %s28_s25 = sadd.s32 1, %s845_s20 }
   0x8   : > { %p26_p0 = scmp.ge.s32.totalorder %s25_s24, 2  ;;  %s87_s26 = sadd.s32 1, %s829_s16 }
   0x9   : > { %p94_p1 = scmp.ne.s32.totalorder %s829_s16, %s825_s15  ;;  %p95_p2 = scmp.eq.s32.totalorder %s849_s21, 0 }
   0xa   : > { %s1089_s24 = smov (%p26_p0, %s25_s24), 0  ;;  %s1091_s25 = smov (!%p26_p0, %s28_s25), %s845_s20 }
   0xb   : > { %p938_p3 = por %p95_p2, %p94_p1  ;;  %s110_s28 = ssub.s32 %s841_s19, %s1089_s24 }
   0xc   : > { %p30_p4 = scmp.ge.s32.totalorder %s1091_s25, 2  ;;  %s115_s29 = sadd.s32 1, %s821_s14 }
   0xd   : > { %p125_p5 = scmp.ne.s32.totalorder %s821_s14, %s817_s13  ;;  %p126_p6 = scmp.eq.s32.totalorder %s574_s22, 3 }
   0xe   : > { %s1093_s25 = smov (%p30_p4, %s1091_s25), 0  ;;  %p131_p8 = scmp.ne.s32.totalorder %s817_s13, %s813_s12 }
   0xf   : > { %p949_p7 = por %p126_p6, %p125_p5  ;;  %s84_s4 = ssub.s32 %s845_s20, %s1093_s25 }
  0x10   : > { %p132_p9 = scmp.eq.s32.totalorder %s575_s23, 3  ;;  %p85_p10 = scmp.eq.s32.totalorder %s84_s4, 0 }
  0x11   : > { %s112_s5 = sor.u32 %s110_s28, %s84_s4  ;;  %p577_p13 = scmp.ge.s32.totalorder %s849_s21, 4 }
  0x12   : > { %p113_p11 = scmp.eq.s32.totalorder %s112_s5, 0  ;;  %p957_p12 = por %p132_p9, %p131_p8 }
  0x13   : > { %s962_s7 = scalar_select %p85_p10, %s829_s16, %s87_s26  }
  0x14   : > { %s965_s8 = scalar_select %p113_p11, %s821_s14, %s115_s29  }
  0x15   : > { %148 = sbr.rel (%p577_p13) target bundleno = 40 (0x28), region = 16 }
  0x1a   : > { %166 = sbr.rel (!%p938_p3) target bundleno = 40 (0x28), region = 28  ;;  %s168_s9 = sand.u32 (%p938_p3), 1, %s829_s16  }
  0x1b   : > { %s579_s10 = sshll.u32 (%p938_p3), %s845_s20, 2  ;;  %s578_s11 = sshll.u32 (%p938_p3), %s168_s9, 6 }
  0x1c   : > { %s975_s28 = scalar_lea.vmem (%p938_p3), %s1074_s2, %s579_s10  ;;  %s170_s26 = scalar_lea.vmem (%p938_p3), [#allocation2], %s578_s11 }
  0x1d   : > { %v189_v0 = vld [vmem:[%s975_s28] sm:$0xf] (%p938_p3)  ;;  %v191_v1 = vld [vmem:[%s975_s28 + $0x8] sm:$0xf] (%p938_p3)  ;;  %v193_v2 = vld [vmem:[%s975_s28 + $0x10] sm:$0xf] (%p938_p3) }
  0x1e   : > { %190 = vst [vmem:[%s170_s26] sm:$0xf] (%p938_p3), %v189_v0  ;;  %192 = vst [vmem:[%s170_s26 + $0x4] sm:$0xf] (%p938_p3), %v191_v1  ;;  %v195_v3 = vld [vmem:[%s975_s28 + $0x18] sm:$0xf] (%p938_p3) }
  0x1f   : > { %v197_v4 = vld [vmem:[%s975_s28 + $0x20] sm:$0xf]  ;;  %194 = vst [vmem:[%s170_s26 + $0x8] sm:$0xf] %v193_v2  ;;  %196 = vst [vmem:[%s170_s26 + $0xc] sm:$0xf] %v195_v3 }
  0x20   : > { %198 = vst [vmem:[%s170_s26 + $0x10] sm:$0xf] %v197_v4  ;;  %v199_v5 = vld [vmem:[%s975_s28 + $0x28] sm:$0xf]  ;;  %v201_v6 = vld [vmem:[%s975_s28 + $0x30] sm:$0xf] }
  0x21   : > { %v203_v7 = vld [vmem:[%s975_s28 + $0x38] sm:$0xf]  ;;  %200 = vst [vmem:[%s170_s26 + $0x14] sm:$0xf] %v199_v5  ;;  %202 = vst [vmem:[%s170_s26 + $0x18] sm:$0xf] %v201_v6 }
  0x22   : > { %204 = vst [vmem:[%s170_s26 + $0x1c] sm:$0xf] %v203_v7  ;;  %v205_v8 = vld [vmem:[%s975_s28 + $0x40] sm:$0xf]  ;;  %v207_v9 = vld [vmem:[%s975_s28 + $0x48] sm:$0xf] }
  0x23   : > { %v209_v10 = vld [vmem:[%s975_s28 + $0x50] sm:$0xf]  ;;  %206 = vst [vmem:[%s170_s26 + $0x20] sm:$0xf] %v205_v8  ;;  %208 = vst [vmem:[%s170_s26 + $0x24] sm:$0xf] %v207_v9 }
  0x24   : > { %210 = vst [vmem:[%s170_s26 + $0x28] sm:$0xf] %v209_v10  ;;  %v211_v11 = vld [vmem:[%s975_s28 + $0x58] sm:$0xf]  ;;  %v213_v12 = vld [vmem:[%s975_s28 + $0x60] sm:$0xf] }
  0x25   : > { %v215_v13 = vld [vmem:[%s975_s28 + $0x68] sm:$0xf]  ;;  %212 = vst [vmem:[%s170_s26 + $0x2c] sm:$0xf] %v211_v11  ;;  %214 = vst [vmem:[%s170_s26 + $0x30] sm:$0xf] %v213_v12 }
  0x26   : > { %216 = vst [vmem:[%s170_s26 + $0x34] sm:$0xf] %v215_v13  ;;  %v217_v14 = vld [vmem:[%s975_s28 + $0x70] sm:$0xf]  ;;  %v219_v15 = vld [vmem:[%s975_s28 + $0x78] sm:$0xf] }
  0x27   : > { %218 = vst [vmem:[%s170_s26 + $0x38] sm:$0xf] %v217_v14  ;;  %220 = vst [vmem:[%s170_s26 + $0x3c] sm:$0xf] %v219_v15 }
  0x28 PF: > { %p580_p0 = scmp.ge.s32.totalorder %s849_s21, 1  ;;  %p275_p1 = scmp.lt.s32.totalorder %s849_s21, 5 }
  0x2a   : > { %p276_p2 = pnand %p580_p0, %p275_p1 }
  0x2b   : > { %s282_s27 = sand.u32 (!%p276_p2), 1, %s825_s15   ;;  %s583_s29 = sshll.u32 (!%p276_p2), %s833_s17, 1 }
  0x2c   : > { %279 = sbr.rel (%p276_p2) target bundleno = 298 (0x12a), region = 69  ;;  %s581_s4 = sshll.u32 (!%p276_p2), %s282_s27, 6 }
  0x2d   : > { %p314_p3 = scmp.lt.s32.totalorder (!%p276_p2), %s583_s29, 3  ;;  %s284_s5 = scalar_lea.vmem (!%p276_p2), [#allocation2], %s581_s4 }
  0x2e   : > { %p319_p4 = scmp.lt.s32.totalorder (!%p276_p2), %s837_s18, 1  ;;  %s310_s22 = sand.u32 (!%p276_p2), 1, %s817_s13  }
  0x2f   : > { %s582_s28 = sshll.u32 (!%p276_p2), %s310_s22, 3  ;;  %s605_s26 = sshll.u32 (!%p276_p2), %s833_s17, 2 }
  0x30   : > { %s312_s10 = scalar_lea.vmem (!%p276_p2), [#allocation3], %s582_s28 }
  0x31   : > { %v851_v16 = vmov 0.0   ;;  %vm852_vm0 = vmmov 0   ;;  %v732_v17 = vld [vmem:[%s284_s5 + $0x38] sm:$0xff]   ;;  %s1095_s29 = smov (!%p314_p3, %s583_s29), 3  ;;  %v733_v18 = vld [vmem:[%s284_s5 + $0x30] sm:$0xff]   ;;  %v734_v19 = vld [vmem:[%s284_s5 + $0x28] sm:$0xff]  }
  0x32   : > { %620 = vmatprep.subr.bf16.mxu0 %v851_v16  ;;  %636 = vmatprep.mubr.msk.bf16.mxu0 %vm852_vm0, %v851_v16  ;;  %s584_s9 = sshll.u32 %s1095_s29, 2  ;;  %v735_v20 = vld [vmem:[%s284_s5 + $0x20] sm:$0xff]   ;;  %v736_v21 = vld [vmem:[%s284_s5 + $0x18] sm:$0xff]   ;;  %v737_v22 = vld [vmem:[%s284_s5 + $0x10] sm:$0xff]  }
  0x33   : > { %621 = vmatpush3.bf16.msra.mxu0 %v732_v17  ;;  %s317_s15 = scalar_lea.vmem %s1072_s0, %s584_s9  ;;  %v738_v23 = vld [vmem:[%s284_s5 + $0x8] sm:$0xff]   ;;  %v739_v24 = vld [vmem:[%s284_s5] sm:$0xff]   ;;  %s469_s9 = sadd.s32 %s837_s18, %s605_s26 }
  0x34   : > { %622 = vmatprep.subr.bf16.mxu0 %v851_v16  ;;  %v740_v25 = vld [vmem:[%s317_s15] sm:$0xff]   ;;  %s320_s23 = scalar_select %p319_p4, %s837_s18, 1 }
  0x35   : > { %s472_s5 = sshll.u32 %s312_s10, 4  ;;  %s600_s11 = sshll.u32 %s469_s9, 6  ;;  %s1008_s5 = int_to_ptr.vmem [resolvable:$true] %s472_s5 }
  0x36   : > { %s321_s4 = scalar_lea.vmem %s1073_s1, %s320_s23  ;;  %s1013_s23 = scalar_lea.hbm %s1075_s3, %s600_s11 }
  0x37   : > { %623 = vmatpush3.bf16.msra.mxu0 %v733_v18  ;;  %v594_v27 = vld [vmem:[%s321_s4] ss:$0 sm:$0xff]  ;;  %s1015_s18 = scalar_lea.sflag [#allocation4], %s310_s22  ;;  %s741_s28 = scalar_lea.vmem %s1008_s5, 128 }
  0x38   : > { %624 = vmatprep.subr.bf16.mxu0 %v851_v16  ;;  %p742_p5 = scmp.ne.s32.totalorder %s1008_s5, %s741_s28  ;;  %s853_s26 = smov [#allocation3]  }
  0x39   : > { %s745_s27 = sshll.u32 %s853_s26, 4  ;;  %s746_s27 = int_to_ptr.vmem [resolvable:$false] %s745_s27 }
  0x3a   : > { %p743_p6 = pnand %p742_p5, %p949_p7  ;;  %s747_s29 = scalar_lea.vmem %s746_s27, 256 }
  0x3b   : > { %625 = vmatpush3.bf16.msra.mxu0 %v734_v19  ;;  %p748_p9 = scmp.lt.s32.totalorder %s1008_s5, %s746_s27  ;;  %p749_p10 = scmp.lt.s32.totalorder %s747_s29, %s741_s28 }
  0x3c   : > { %626 = vmatprep.subr.bf16.mxu0 %v851_v16  ;;  %p744_p8 = pneg %p743_p6 }
  0x3d   : > { %p750_p11 = por %p749_p10, %p748_p9 }
  0x3f   : > { %627 = vmatpush3.bf16.msra.mxu0 %v735_v20  ;;  %p751_p13 = pnand %p750_p11, %p744_p8 }
  0x40   : > { %628 = vmatprep.subr.bf16.mxu0 %v851_v16 }
  0x43   : > { %629 = vmatpush3.bf16.msra.mxu0 %v736_v21 }
  0x44   : > { %630 = vmatprep.subr.bf16.mxu0 %v851_v16 }
  0x47   : > { %631 = vmatpush3.bf16.msra.mxu0 %v737_v22 }
  0x48   : > { %632 = vmatprep.subr.bf16.mxu0 %v851_v16 }
  0x4b   : > { %633 = vmatpush3.bf16.msra.mxu0 %v738_v23 }
  0x4c   : > { %634 = vmatprep.subr.bf16.mxu0 %v851_v16 }
  0x4f   : > { %635 = vmatpush3.bf16.msra.mxu0 %v739_v24 }
  0x52   : > { %637 = vmatmul.mubr.bf16.vlgmr.msra.gmra.mxu0 %v740_v25 }
 0x112   : > { %v430_v26 = vpop.f32.mrf.mxu0 }
 0x113   : > { %v444_v30 = vmul.f32 %v594_v27, %v430_v26 }
 0x114   : > { %v638_v28 = vpop.f32.mrf.mxu0 }
 0x116   : > { %v433_v29 = vpop.f32.mrf.mxu0 }
 0x117   : > { %v445_v31 = vmul.f32 %v594_v27, %v433_v29 }
 0x118   : > { %v639_v32 = vpop.f32.mrf.mxu0 }
 0x119   : > { %v609_v33 = vpack.c.bf16 %v445_v31, %v444_v30 }
 0x11b   : > { %610 = vst [vmem:[%s312_s10] sm:$0xff] %v609_v33  }
 0x11c   : > { %754 = shalt.err (!%p751_p13)
}
 0x11d   : > { %s755_s22 = scalar_lea.hbm %s1013_s23, 128  ;;  %s759_s10 = scalar_lea.hbm %s1075_s3, 512 }
 0x11e   : > { %p756_p0 = scmp.ne.s32.totalorder %s1013_s23, %s755_s22  ;;  %p760_p3 = scmp.lt.s32.totalorder %s1013_s23, %s1075_s3 }
 0x11f   : > { %p761_p4 = scmp.lt.s32.totalorder %s759_s10, %s755_s22 }
 0x120   : > { %p757_p1 = pnand %p756_p0, %p949_p7 }
 0x121   : > { %p762_p5 = por %p761_p4, %p760_p3 }
 0x122   : > { %p758_p2 = pneg %p757_p1 }
 0x124   : > { %p763_p6 = pnand %p762_p5, %p758_p2 }
 0x126   : > { %766 = shalt.err (!%p763_p6)
}
 0x127   : > { %s854_s15 = smov 64   ;;  %s855_s28 = smov 128  }
 0x128   : > { %s856_s26 = smov 4  }
 0x129   : > { %640 = dma.vmem_to_hbm [thread:$0]  (%p949_p7), %s1008_s5, 128, %s1013_s23, %s1015_s18, %s854_s15, %s855_s28, %s856_s26  }
 0x12a PF: > { %p646_p8 = scmp.ge.s32.totalorder %s849_s21, 2  ;;  %s487_s27 = sand.u32 1, %s813_s12  }
 0x12b   : > { %s488_s29 = scalar_lea.sflag [#allocation4], %s487_s27 }
 0x12c   : > { %p643_p9 = pnand %p646_p8, %p957_p12 }
 0x12e   : > { %p644_p10 = pneg %p643_p9 }
 0x130   : > { %808 = dma.done.wait (%p644_p10), %s488_s29, 128  }
 0x131   : > { %810 = vsyncadd (%p644_p10), %s488_s29, 4294967168  ;;  %s16_s21 = sadd.s32 1, %s849_s21   ;;  %s1079_s12 = smov %s817_s13 }
 0x132   : > { %p13_p11 = scmp.ge.s32.totalorder %s16_s21, 6   ;;  %s1080_s13 = smov %s821_s14 }
 0x133   : > { %s1081_s14 = smov %s965_s8  ;;  %s1082_s15 = smov %s829_s16 }
 0x134   : > { %s1083_s16 = smov %s962_s7  ;;  %s1084_s17 = smov %s841_s19 }
 0x135   : > { %s1085_s18 = smov %s845_s20  ;;  %s1086_s19 = smov %s1089_s24 }
 0x136   : > { %s1087_s20 = smov %s1093_s25  ;;  %15 = sbr.rel (!%p13_p11) target bundleno = 6 (0x6), region = 119 }
 0x13b   :  { %493 = vsyncpa [#allocation4], 1 }
 0x13c   :  { %495 = vsyncpa [#allocation4 + $0x1], 1 }

// kernel: head_forward.2
= control target key start
LH: loop header
LB: loop body
LE: loop exit
PB: predicated region body
PF: predicated region fallthrough
CT: control target
= control target key end

     0   :  { %s971_s24 = smov 0   ;;  %s1106_s0 = inlined_call_operand.vmem [shape: bf16[32,128], index: 0, kind: input, shape index: {}]   ;;  %s1107_s1 = inlined_call_operand.vmem [shape: bf16[128,128], index: 1, kind: input, shape index: {}]   ;;  %s1108_s2 = inlined_call_operand.vmem [shape: f32[1,128], index: 2, kind: input, shape index: {}]   ;;  %s1109_s3 = inlined_call_operand.vmem [shape: bf16[128,128], index: 3, kind: input, shape index: {}]   ;;  %s1110_s4 = inlined_call_operand.vmem [shape: f32[1,128], index: 4, kind: input, shape index: {}]   ;;  %s1111_s5 = inlined_call_operand.vmem [shape: bf16[128,128], index: 5, kind: input, shape index: {}]   ;;  %s1112_s6 = inlined_call_operand.vmem [shape: f32[1,128], index: 6, kind: input, shape index: {}]   ;;  %s1113_s7 = inlined_call_operand.vmem [shape: bf16[32,128], index: 7, kind: output, shape index: {}]  }
   0x1 LB: > { %s735_s25 = sadd.s32 4294967295, %s927_s24   ;;  %p739_p0 = scmp.ge.s32.totalorder %s927_s24, 1  ;;  %s927_s24 = sphi %s971_s24, %s17_s24  }
   0x2   : > { %p238_p1 = scmp.lt.s32.totalorder %s927_s24, 3 }
   0x4   : > { %p239_p2 = pnand %p739_p0, %p238_p1 }
   0x5   : > { %s740_s30 = sshll.u32 (!%p239_p2), %s735_s25, 1 }
   0x6   : > { %242 = sbr.rel (%p239_p2) target bundleno = 852 (0x354), region = 48  ;;  %p271_p3 = scmp.lt.s32.totalorder (!%p239_p2), %s740_s30, 3 }
   0xb   : > { %v884_v0 = vld [vmem:[%s1107_s1 + $0x38] sm:$0xff]   ;;  %v929_v1 = vmov 0.0   ;;  %v885_v2 = vld [vmem:[%s1107_s1 + $0x30] sm:$0xff]   ;;  %vm930_vm0 = vmmov 0   ;;  %s1115_s30 = smov (!%p271_p3, %s740_s30), 3  ;;  %v886_v3 = vld [vmem:[%s1107_s1 + $0x28] sm:$0xff]  }
   0xc   : > { %814 = vmatprep.subr.bf16.mxu0 %v929_v1  ;;  %834 = vmatprep.subr.bf16.mxu1 %v929_v1  ;;  %s741_s10 = sshll.u32 %s1115_s30, 2  ;;  %v887_v4 = vld [vmem:[%s1107_s1 + $0x20] sm:$0xff]   ;;  %v888_v5 = vld [vmem:[%s1107_s1 + $0x18] sm:$0xff]   ;;  %v889_v6 = vld [vmem:[%s1107_s1 + $0x10] sm:$0xff]  }
   0xd   : > { %815 = vmatpush3.bf16.msra.mxu0 %v884_v0  ;;  %830 = vmatprep.mubr.msk.bf16.mxu0 %vm930_vm0, %v929_v1  ;;  %s274_s13 = scalar_lea.vmem %s1106_s0, %s741_s10  ;;  %v890_v7 = vld [vmem:[%s1107_s1 + $0x8] sm:$0xff]   ;;  %v891_v8 = vld [vmem:[%s1107_s1] sm:$0xff]   ;;  %v893_v10 = vld [vmem:[%s1109_s3 + $0x38] sm:$0xff]   ;;  %s280_s25 = scalar_lea.vmem %s1113_s7, %s741_s10 }
   0xe   : > { %816 = vmatprep.subr.bf16.mxu0 %v929_v1  ;;  %850 = vmatprep.mubr.msk.bf16.mxu1 %vm930_vm0, %v929_v1  ;;  %v892_v9 = vld [vmem:[%s274_s13] sm:$0xff]   ;;  %v894_v11 = vld [vmem:[%s1109_s3 + $0x30] sm:$0xff]   ;;  %v895_v12 = vld [vmem:[%s1109_s3 + $0x28] sm:$0xff]  }
   0xf   : > { %835 = vmatpush3.bf16.msra.mxu1 %v893_v10  ;;  %v896_v13 = vld [vmem:[%s1109_s3 + $0x20] sm:$0xff]   ;;  %v897_v14 = vld [vmem:[%s1109_s3 + $0x18] sm:$0xff]   ;;  %v898_v15 = vld [vmem:[%s1109_s3 + $0x10] sm:$0xff]  }
  0x10   : > { %836 = vmatprep.subr.bf16.mxu1 %v929_v1  ;;  %v899_v16 = vld [vmem:[%s1109_s3 + $0x8] sm:$0xff]   ;;  %v900_v17 = vld [vmem:[%s1109_s3] sm:$0xff]   ;;  %v901_v38 = vld [vmem:[%s1111_s5 + $0x38] sm:$0xff]  }
  0x11   : > { %817 = vmatpush3.bf16.msra.mxu0 %v885_v2  ;;  %v744_v18 = vld [vmem:[%s1108_s2] ss:$0 sm:$0xff]  ;;  %v902_v39 = vld [vmem:[%s1111_s5 + $0x30] sm:$0xff]   ;;  %v903_v40 = vld [vmem:[%s1111_s5 + $0x28] sm:$0xff]  }
  0x12   : > { %818 = vmatprep.subr.bf16.mxu0 %v929_v1  ;;  %v904_v41 = vld [vmem:[%s1111_s5 + $0x20] sm:$0xff]   ;;  %v905_v42 = vld [vmem:[%s1111_s5 + $0x18] sm:$0xff]   ;;  %v906_v43 = vld [vmem:[%s1111_s5 + $0x10] sm:$0xff]  }
  0x13   : > { %837 = vmatpush3.bf16.msra.mxu1 %v894_v11  ;;  %v907_v44 = vld [vmem:[%s1111_s5 + $0x8] sm:$0xff]   ;;  %v908_v45 = vld [vmem:[%s1111_s5] sm:$0xff]  }
  0x14   : > { %838 = vmatprep.subr.bf16.mxu1 %v929_v1  ;;  %v756_v46 = vld [vmem:[%s1110_s4] ss:$0 sm:$0xff] }
  0x15   : > { %819 = vmatpush3.bf16.msra.mxu0 %v886_v3  ;;  %v767_v2 = vld [vmem:[%s1112_s6] ss:$0 sm:$0xff] }
  0x16   : > { %820 = vmatprep.subr.bf16.mxu0 %v929_v1 }
  0x17   : > { %839 = vmatpush3.bf16.msra.mxu1 %v895_v12 }
  0x18   : > { %840 = vmatprep.subr.bf16.mxu1 %v929_v1 }
  0x19   : > { %821 = vmatpush3.bf16.msra.mxu0 %v887_v4 }
  0x1a   : > { %822 = vmatprep.subr.bf16.mxu0 %v929_v1 }
  0x1b   : > { %841 = vmatpush3.bf16.msra.mxu1 %v896_v13 }
  0x1c   : > { %842 = vmatprep.subr.bf16.mxu1 %v929_v1 }
  0x1d   : > { %823 = vmatpush3.bf16.msra.mxu0 %v888_v5 }
  0x1e   : > { %824 = vmatprep.subr.bf16.mxu0 %v929_v1 }
  0x1f   : > { %843 = vmatpush3.bf16.msra.mxu1 %v897_v14 }
  0x20   : > { %844 = vmatprep.subr.bf16.mxu1 %v929_v1 }
  0x21   : > { %825 = vmatpush3.bf16.msra.mxu0 %v889_v6 }
  0x22   : > { %826 = vmatprep.subr.bf16.mxu0 %v929_v1 }
  0x23   : > { %845 = vmatpush3.bf16.msra.mxu1 %v898_v15 }
  0x24   : > { %846 = vmatprep.subr.bf16.mxu1 %v929_v1 }
  0x25   : > { %827 = vmatpush3.bf16.msra.mxu0 %v890_v7 }
  0x26   : > { %828 = vmatprep.subr.bf16.mxu0 %v929_v1 }
  0x27   : > { %847 = vmatpush3.bf16.msra.mxu1 %v899_v16 }
  0x28   : > { %848 = vmatprep.subr.bf16.mxu1 %v929_v1 }
  0x29   : > { %829 = vmatpush3.bf16.msra.mxu0 %v891_v8 }
  0x2a   : > { %854 = vmatprep.subr.bf16.mxu0 %v929_v1 }
  0x2b   : > { %849 = vmatpush3.bf16.msra.mxu1 %v900_v17 }
  0x2c   : > { %831 = vmatmul.mubr.bf16.vlgmr.msra.gmra.mxu0 %v892_v9 }
  0x2d   : > { %870 = vmatprep.mubr.msk.bf16.mxu0 %vm930_vm0, %v929_v1  ;;  %855 = vmatpush3.bf16.msra.mxu0 %v901_v38 }
  0x2e   : > { %856 = vmatprep.subr.bf16.mxu0 %v929_v1 }
  0x31   : > { %857 = vmatpush3.bf16.msra.mxu0 %v902_v39 }
  0x32   : > { %858 = vmatprep.subr.bf16.mxu0 %v929_v1 }
  0x35   : > { %859 = vmatpush3.bf16.msra.mxu0 %v903_v40 }
  0x36   : > { %860 = vmatprep.subr.bf16.mxu0 %v929_v1 }
  0x39   : > { %861 = vmatpush3.bf16.msra.mxu0 %v904_v41 }
  0x3a   : > { %862 = vmatprep.subr.bf16.mxu0 %v929_v1 }
  0x3d   : > { %863 = vmatpush3.bf16.msra.mxu0 %v905_v42 }
  0x3e   : > { %864 = vmatprep.subr.bf16.mxu0 %v929_v1 }
  0x41   : > { %865 = vmatpush3.bf16.msra.mxu0 %v906_v43 }
  0x42   : > { %866 = vmatprep.subr.bf16.mxu0 %v929_v1 }
  0x45   : > { %867 = vmatpush3.bf16.msra.mxu0 %v907_v44 }
  0x46   : > { %868 = vmatprep.subr.bf16.mxu0 %v929_v1 }
  0x49   : > { %869 = vmatpush3.bf16.msra.mxu0 %v908_v45 }
  0xec   : > { %v396_v19 = vpop.f32.mrf.mxu0 }
  0xed   : > { %v397_v20 = vadd.f32 %v744_v18, %v396_v19 }
  0xee   : > { %v832_v21 = vpop.f32.mrf.mxu0 }
  0xef   : > { %v405_v22 = vmul.f32 1.442695, %v397_v20  ;;  %vm403_vm1 = vcmp.gt.f32.partialorder %v397_v20, 0.0 }
  0xf0   : > { %v399_v23 = vpop.f32.mrf.mxu0 }
  0xf1   : > { %909 = vpow2.f32 %v405_v22  ;;  %v400_v24 = vadd.f32 %v744_v18, %v399_v23 }
  0xf2   : > { %v833_v25 = vpop.f32.mrf.mxu0 }
  0xf3   : > { %v407_v26 = vmul.f32 1.442695, %v400_v24  ;;  %vm404_vm2 = vcmp.gt.f32.partialorder %v400_v24, 0.0 }
  0xf5   : > { %911 = vpow2.f32 %v407_v26 }
  0xfe   : > { %v910_v27 = vpop.eup %909 }
  0xff   : > { %v754_v28 = vadd.f32 -1.0, %v910_v27 }
 0x101   : > { %v411_v29 = vmul.f32 1.6732632, %v754_v28 }
 0x102   : > { %v912_v30 = vpop.eup %911 }
 0x103   : > { %v755_v31 = vadd.f32 -1.0, %v912_v30  ;;  %v413_v32 = vsel %vm403_vm1, %v397_v20, %v411_v29 }
 0x104   : > { %v415_v35 = vmul.f32 1.050701, %v413_v32 }
 0x105   : > { %v412_v33 = vmul.f32 1.6732632, %v755_v31 }
 0x107   : > { %v414_v34 = vsel %vm404_vm2, %v400_v24, %v412_v33 }
 0x108   : > { %v416_v36 = vmul.f32 1.050701, %v414_v34 }
 0x10a   : > { %v417_v37 = vpack.c.bf16 %v416_v36, %v415_v35 }
 0x10c   : > { %851 = vmatmul.mubr.bf16.vlgmr.msra.gmra.mxu1 %v417_v37 }
 0x1cc   : > { %v523_v47 = vpop.f32.mrf.mxu1 }
 0x1cd   : > { %v524_v48 = vadd.f32 %v756_v46, %v523_v47 }
 0x1ce   : > { %v852_v49 = vpop.f32.mrf.mxu1 }
 0x1cf   : > { %v532_v50 = vmul.f32 1.442695, %v524_v48  ;;  %vm530_vm3 = vcmp.gt.f32.partialorder %v524_v48, 0.0 }
 0x1d0   : > { %v526_v51 = vpop.f32.mrf.mxu1 }
 0x1d1   : > { %913 = vpow2.f32 %v532_v50  ;;  %v527_v52 = vadd.f32 %v756_v46, %v526_v51 }
 0x1d2   : > { %v853_v53 = vpop.f32.mrf.mxu1 }
 0x1d3   : > { %v534_v54 = vmul.f32 1.442695, %v527_v52  ;;  %vm531_vm4 = vcmp.gt.f32.partialorder %v527_v52, 0.0 }
 0x1d5   : > { %915 = vpow2.f32 %v534_v54 }
 0x1de   : > { %v914_v55 = vpop.eup %913 }
 0x1df   : > { %v765_v56 = vadd.f32 -1.0, %v914_v55 }
 0x1e1   : > { %v538_v57 = vmul.f32 1.6732632, %v765_v56 }
 0x1e2   : > { %v916_v58 = vpop.eup %915 }
 0x1e3   : > { %v766_v59 = vadd.f32 -1.0, %v916_v58  ;;  %v540_v60 = vsel %vm530_vm3, %v524_v48, %v538_v57 }
 0x1e4   : > { %v542_v63 = vmul.f32 1.050701, %v540_v60 }
 0x1e5   : > { %v539_v61 = vmul.f32 1.6732632, %v766_v59 }
 0x1e7   : > { %v541_v62 = vsel %vm531_vm4, %v527_v52, %v539_v61 }
 0x1e8   : > { %v543_v0 = vmul.f32 1.050701, %v541_v62 }
 0x1ea   : > { %v544_v1 = vpack.c.bf16 %v543_v0, %v542_v63 }
 0x1ec   : > { %871 = vmatmul.mubr.bf16.vlgmr.msra.gmra.mxu0 %v544_v1 }
 0x2ac   : > { %v650_v3 = vpop.f32.mrf.mxu0 }
 0x2ad   : > { %v651_v4 = vadd.f32 %v767_v2, %v650_v3 }
 0x2ae   : > { %v872_v5 = vpop.f32.mrf.mxu0 }
 0x2af   : > { %v657_v6 = vmul.f32 %v651_v4, %v651_v4 }
 0x2b0   : > { %v653_v7 = vpop.f32.mrf.mxu0 }
 0x2b1   : > { %v654_v8 = vadd.f32 %v767_v2, %v653_v7  ;;  %659 = vadd.xlane.f32.xlu0 %v657_v6 }
 0x2b2   : > { %v873_v9 = vpop.f32.mrf.mxu0 }
 0x2b3   : > { %v658_v10 = vmul.f32 %v654_v8, %v654_v8 }
 0x2b5   : > { %661 = vadd.xlane.f32.xlu0 %v658_v10 }
 0x33a   : > { %v660_v11 = vpop.xlane.xlu0 %659 }
 0x33b   : > { %v663_v12 = vmax.f32 %v660_v11, 1e-24 }
 0x33d   : > { %917 = vrsqrt.f32 %v663_v12 }
 0x33e   : > { %v662_v13 = vpop.xlane.xlu0 %661 }
 0x33f   : > { %v664_v14 = vmax.f32 %v662_v13, 1e-24 }
 0x341   : > { %919 = vrsqrt.f32 %v664_v14 }
 0x34a   : > { %v918_v15 = vpop.eup %917 }
 0x34b   : > { %v667_v17 = vmul.f32 %v918_v15, %v651_v4 }
 0x34e   : > { %v920_v16 = vpop.eup %919 }
 0x34f   : > { %v668_v18 = vmul.f32 %v920_v16, %v654_v8 }
 0x351   : > { %v785_v19 = vpack.c.bf16 %v668_v18, %v667_v17 }
 0x353   : > { %786 = vst [vmem:[%s280_s25] sm:$0xff] %v785_v19  }
 0x354 PF: > { %s17_s24 = sadd.s32 1, %s927_s24  }
 0x355   : > { %p14_p4 = scmp.ge.s32.totalorder %s17_s24, 4  }
 0x357   :  { %16 = sbr.rel (!%p14_p4) target bundleno = 1 (0x1), region = 78 }

</bundles_post_ra>
